<compile_context>
chip_gen: v7x
topology: tpu7x:2x2x1
jax: 0.10.0
libtpu: 0.0.40
codegen_flags: <defaults>
</compile_context>

<pallas_src>
import functools

import jax
import jax.numpy as jnp
from jax import lax
from jax.experimental import pallas as pl
from jax.experimental.pallas import tpu as pltpu


def _round_up(x, m):
    return ((x + m - 1) // m) * m


def _conv_block_kernel(x_ref, w1_ref, b1_ref, w2_ref, b2_ref, mask_ref,
                       o_ref, hpad_ref, *, H, W, K):
    """One image per grid step.

    x_ref   : (cin, Lin)       bf16 flat zero-padded input (Hp*Wp data + zeros)
    w1_ref  : (K*K, hid, cin)  bf16 conv1 weights, tap-major (t = kh*K + kw)
    b1_ref  : (hid, 1)         f32
    w2_ref  : (K*K, cout, hid) bf16 conv2 weights, tap-major
    b2_ref  : (cout, 1)        f32
    mask_ref: (1, Lout)        f32: 1.0 on valid flat-(H,Wp) columns, else 0.0
    o_ref   : (cout, Lout)     conv2 + SiLU output over the flat (H,Wp) domain
    hpad_ref: (hid, Lh)        bf16 scratch: flat zero-padded hidden activation
    """
    p = K // 2
    Wp = W + 2 * p
    head = p * Wp + p                 # logical offset of h[0] inside padded-h
    phys = _round_up(head, 128)       # 128-aligned physical store offset
    pb = phys - head                  # physical column holding padded_h[0]
    hid, Lh = hpad_ref.shape
    cout, Lout = o_ref.shape

    # ---- conv1: K*K accumulating MXU dots (bf16 operands, f32 accumulation) --
    acc1 = jnp.zeros((hid, Lout), jnp.float32)
    for kh in range(K):
        for kw in range(K):
            off = kh * Wp + kw
            acc1 += jnp.dot(w1_ref[kh * K + kw], x_ref[:, off:off + Lout],
                            preferred_element_type=jnp.float32)
    # Bias + validity mask in f32 on the VPU; the mask zeroes the wrap-around
    # and tail columns so they become the zero padding of the hidden activation.
    h = (acc1 + b1_ref[...]) * mask_ref[...]

    # ---- flat zero-padded hidden activation (all stores 128-lane aligned) ----
    hpad_ref[:, 0:phys] = jnp.zeros((hid, phys), hpad_ref.dtype)
    hpad_ref[:, phys:phys + Lout] = h.astype(hpad_ref.dtype)
    if Lh > phys + Lout:
        hpad_ref[:, phys + Lout:Lh] = jnp.zeros((hid, Lh - phys - Lout),
                                                hpad_ref.dtype)

    # ---- conv2: K*K accumulating dots over lane-shifted hpad slices ----------
    acc2 = jnp.zeros((cout, Lout), jnp.float32)
    for kh in range(K):
        for kw in range(K):
            off = pb + kh * Wp + kw
            acc2 += jnp.dot(w2_ref[kh * K + kw], hpad_ref[:, off:off + Lout],
                            preferred_element_type=jnp.float32)

    y = acc2 + b2_ref[...]
    o_ref[...] = (y * jax.nn.sigmoid(y)).astype(o_ref.dtype)   # SiLU (EUP)


def conv_block_forward(x_nchw, w1, b1, w2, b2, sigma=None):
    """Conv2d(padding='same') -> Conv2d(padding='same') -> SiLU.

    w1: (hidden, in_ch, K, K), w2: (out_ch, hidden, K, K)  (PyTorch OIHW).
    sigma is accepted for API parity but unused (same as the PyTorch forward).
    """
    B, cin, H, W = x_nchw.shape
    hid, _, K, _ = w1.shape
    cout = w2.shape[0]
    p = K // 2
    Hp, Wp = H + 2 * p, W + 2 * p
    HWp = H * Wp

    head = p * Wp + p
    phys = _round_up(head, 128)
    pb = phys - head
    maxoff = (K - 1) * Wp + (K - 1)
    Lout = _round_up(HWp, 128)                                    # 384
    Lin = _round_up(maxoff + Lout, 128)                           # 512
    Lh = _round_up(max(phys + Lout, pb + maxoff + Lout), 128)     # 640

    # Flat zero-padded input (one tiny pad+reshape on the XLA side; the 3x3
    # im2col is assembled inside the kernel as K*K accumulating dots).
    xp = jnp.pad(x_nchw, ((0, 0), (0, 0), (p, p), (p, p)))
    x3 = jnp.pad(xp.reshape(B, cin, Hp * Wp),
                 ((0, 0), (0, 0), (0, Lin - Hp * Wp))).astype(jnp.bfloat16)

    # Tap-major weights (t = kh*K + kw), bf16 for the MXU; f32 biases.
    w1t = jnp.transpose(w1, (2, 3, 0, 1)).reshape(K * K, hid, cin)
    w1t = w1t.astype(jnp.bfloat16)
    w2t = jnp.transpose(w2, (2, 3, 0, 1)).reshape(K * K, cout, hid)
    w2t = w2t.astype(jnp.bfloat16)
    b1c = b1.reshape(hid, 1).astype(jnp.float32)
    b2c = b2.reshape(cout, 1).astype(jnp.float32)

    # Validity mask over the flat (H, Wp) domain, padded to Lout lanes.
    col = jnp.arange(Lout, dtype=jnp.int32)
    mask = ((col < HWp) & ((col % Wp) < W)).astype(jnp.float32).reshape(1, Lout)

    kernel = functools.partial(_conv_block_kernel, H=H, W=W, K=K)

    out3 = pl.pallas_call(
        kernel,
        out_shape=jax.ShapeDtypeStruct((B, cout, Lout), x_nchw.dtype),
        grid_spec=pltpu.PrefetchScalarGridSpec(
            num_scalar_prefetch=0,
            grid=(B,),
            in_specs=[
                pl.BlockSpec((None, cin, Lin), lambda b: (b, 0, 0)),
                pl.BlockSpec((K * K, hid, cin), lambda b: (0, 0, 0)),
                pl.BlockSpec((hid, 1), lambda b: (0, 0)),
                pl.BlockSpec((K * K, cout, hid), lambda b: (0, 0, 0)),
                pl.BlockSpec((cout, 1), lambda b: (0, 0)),
                pl.BlockSpec((1, Lout), lambda b: (0, 0)),
            ],
            out_specs=pl.BlockSpec((None, cout, Lout), lambda b: (b, 0, 0)),
            scratch_shapes=[pltpu.VMEM((hid, Lh), jnp.bfloat16)],
        ),
        compiler_params=pltpu.CompilerParams(
            dimension_semantics=("parallel",)),
    )(x3, w1t, b1c, w2t, b2c, mask)

    # Drop the lane padding and the wrap-around columns.
    return out3[:, :, :HWp].reshape(B, cout, H, Wp)[:, :, :, :W]


def _reference(x_nchw, w1, b1, w2, b2):
    """Plain-JAX reference matching Conv2d(padding='same') -> Conv2d -> SiLU."""
    dn = ("NCHW", "OIHW", "NCHW")
    h = lax.conv_general_dilated(x_nchw, w1, (1, 1), "SAME",
                                 dimension_numbers=dn) + b1[None, :, None, None]
    y = lax.conv_general_dilated(h, w2, (1, 1), "SAME",
                                 dimension_numbers=dn) + b2[None, :, None, None]
    return y * jax.nn.sigmoid(y)


if __name__ == "__main__":
    B, in_ch, out_ch, hidden_ch, K = 2, 4, 4, 32, 3
    H = W = 16

    key = jax.random.PRNGKey(0)
    kx, k1, kb1, k2, kb2 = jax.random.split(key, 5)

    x = jax.random.normal(kx, (B, in_ch, H, W), jnp.float32)
    # Deterministic synthetic parameters (PyTorch Conv2d shapes: OIHW + bias).
    w1 = jax.random.normal(k1, (hidden_ch, in_ch, K, K), jnp.float32) * 0.1
    b1 = jax.random.normal(kb1, (hidden_ch,), jnp.float32) * 0.1
    w2 = jax.random.normal(k2, (out_ch, hidden_ch, K, K), jnp.float32) * 0.1
    b2 = jax.random.normal(kb2, (out_ch,), jnp.float32) * 0.1

    fwd = jax.jit(conv_block_forward)
    out = jax.block_until_ready(fwd(x, w1, b1, w2, b2))

    ref = _reference(x, w1, b1, w2, b2)
    assert out.shape == (B, out_ch, H, W), out.shape
    err = float(jnp.max(jnp.abs(out - ref)))
    # bf16 MXU operands with f32 accumulation: tolerance loosened per review.
    assert jnp.allclose(out, ref, atol=5e-2, rtol=5e-2), err

    print("KERNEL_OK")
</pallas_src>

<mosaic_0001>
module attributes {stable_mosaic.version = 11 : i64} {
  func.func @_conv_block_kernel(%arg0: i32, %arg1: memref<1x4x512xbf16, #tpu.memory_space<vmem>>, %arg2: memref<9x32x4xbf16, #tpu.memory_space<vmem>>, %arg3: memref<32x1xf32, #tpu.memory_space<vmem>>, %arg4: memref<9x4x32xbf16, #tpu.memory_space<vmem>>, %arg5: memref<4x1xf32, #tpu.memory_space<vmem>>, %arg6: memref<1x384xf32, #tpu.memory_space<vmem>>, %arg7: memref<1x4x384xf32, #tpu.memory_space<vmem>>, %arg8: memref<32x640xbf16, #tpu.memory_space<vmem>>) attributes {dimension_semantics = [#tpu.dimension_semantics<parallel>], iteration_bounds = array<i64: 2>, scalar_prefetch = 0 : i64, scratch_operands = 1 : i64, tpu.core_type = #tpu.core_type<tc>, window_params = [{transform_indices = @transform_0, window_bounds = array<i64: 1, 4, 512>}, {pipeline_mode = #tpu.pipeline_mode<synchronous>, transform_indices = @transform_1, window_bounds = array<i64: 9, 32, 4>}, {pipeline_mode = #tpu.pipeline_mode<synchronous>, transform_indices = @transform_2, window_bounds = array<i64: 32, 1>}, {pipeline_mode = #tpu.pipeline_mode<synchronous>, transform_indices = @transform_3, window_bounds = array<i64: 9, 4, 32>}, {pipeline_mode = #tpu.pipeline_mode<synchronous>, transform_indices = @transform_4, window_bounds = array<i64: 4, 1>}, {pipeline_mode = #tpu.pipeline_mode<synchronous>, transform_indices = @transform_5, window_bounds = array<i64: 1, 384>}, {transform_indices = @transform_6, window_bounds = array<i64: 1, 4, 384>}]} {
    %cst = arith.constant 0.000000e+00 : f32
    %0 = vector.broadcast %cst : f32 to vector<32x384xf32>
    %c0 = arith.constant 0 : index
    %c0_0 = arith.constant 0 : index
    %c0_1 = arith.constant 0 : index
    %1 = vector.load %arg2[%c0, %c0_0, %c0_1] : memref<9x32x4xbf16, #tpu.memory_space<vmem>>, vector<1x32x4xbf16>
    %2 = vector.shape_cast %1 : vector<1x32x4xbf16> to vector<32x4xbf16>
    %c0_2 = arith.constant 0 : index
    %c0_3 = arith.constant 0 : index
    %c0_4 = arith.constant 0 : index
    %3 = vector.load %arg1[%c0_2, %c0_3, %c0_4] : memref<1x4x512xbf16, #tpu.memory_space<vmem>>, vector<1x4x384xbf16>
    %4 = vector.shape_cast %3 : vector<1x4x384xbf16> to vector<4x384xbf16>
    %cst_5 = arith.constant dense<0.000000e+00> : vector<32x384xf32>
    %5 = tpu.matmul %2, %4, %cst_5 {dimension_numbers = #tpu.dot_dimension_numbers<[1], [0], [0], [1], [0, 0, 1, 1], [], []>} : vector<32x4xbf16>, vector<4x384xbf16>, vector<32x384xf32> -> vector<32x384xf32>
    %6 = arith.addf %0, %5 : vector<32x384xf32>
    %c1 = arith.constant 1 : index
    %c0_6 = arith.constant 0 : index
    %c0_7 = arith.constant 0 : index
    %7 = vector.load %arg2[%c1, %c0_6, %c0_7] : memref<9x32x4xbf16, #tpu.memory_space<vmem>>, vector<1x32x4xbf16>
    %8 = vector.shape_cast %7 : vector<1x32x4xbf16> to vector<32x4xbf16>
    %c0_8 = arith.constant 0 : index
    %c0_9 = arith.constant 0 : index
    %c1_10 = arith.constant 1 : index
    %9 = vector.load %arg1[%c0_8, %c0_9, %c1_10] : memref<1x4x512xbf16, #tpu.memory_space<vmem>>, vector<1x4x384xbf16>
    %10 = vector.shape_cast %9 : vector<1x4x384xbf16> to vector<4x384xbf16>
    %cst_11 = arith.constant dense<0.000000e+00> : vector<32x384xf32>
    %11 = tpu.matmul %8, %10, %cst_11 {dimension_numbers = #tpu.dot_dimension_numbers<[1], [0], [0], [1], [0, 0, 1, 1], [], []>} : vector<32x4xbf16>, vector<4x384xbf16>, vector<32x384xf32> -> vector<32x384xf32>
    %12 = arith.addf %6, %11 : vector<32x384xf32>
    %c2 = arith.constant 2 : index
    %c0_12 = arith.constant 0 : index
    %c0_13 = arith.constant 0 : index
    %13 = vector.load %arg2[%c2, %c0_12, %c0_13] : memref<9x32x4xbf16, #tpu.memory_space<vmem>>, vector<1x32x4xbf16>
    %14 = vector.shape_cast %13 : vector<1x32x4xbf16> to vector<32x4xbf16>
    %c0_14 = arith.constant 0 : index
    %c0_15 = arith.constant 0 : index
    %c2_16 = arith.constant 2 : index
    %15 = vector.load %arg1[%c0_14, %c0_15, %c2_16] : memref<1x4x512xbf16, #tpu.memory_space<vmem>>, vector<1x4x384xbf16>
    %16 = vector.shape_cast %15 : vector<1x4x384xbf16> to vector<4x384xbf16>
    %cst_17 = arith.constant dense<0.000000e+00> : vector<32x384xf32>
    %17 = tpu.matmul %14, %16, %cst_17 {dimension_numbers = #tpu.dot_dimension_numbers<[1], [0], [0], [1], [0, 0, 1, 1], [], []>} : vector<32x4xbf16>, vector<4x384xbf16>, vector<32x384xf32> -> vector<32x384xf32>
    %18 = arith.addf %12, %17 : vector<32x384xf32>
    %c3 = arith.constant 3 : index
    %c0_18 = arith.constant 0 : index
    %c0_19 = arith.constant 0 : index
    %19 = vector.load %arg2[%c3, %c0_18, %c0_19] : memref<9x32x4xbf16, #tpu.memory_space<vmem>>, vector<1x32x4xbf16>
    %20 = vector.shape_cast %19 : vector<1x32x4xbf16> to vector<32x4xbf16>
    %c0_20 = arith.constant 0 : index
    %c0_21 = arith.constant 0 : index
    %c18 = arith.constant 18 : index
    %21 = vector.load %arg1[%c0_20, %c0_21, %c18] : memref<1x4x512xbf16, #tpu.memory_space<vmem>>, vector<1x4x384xbf16>
    %22 = vector.shape_cast %21 : vector<1x4x384xbf16> to vector<4x384xbf16>
    %cst_22 = arith.constant dense<0.000000e+00> : vector<32x384xf32>
    %23 = tpu.matmul %20, %22, %cst_22 {dimension_numbers = #tpu.dot_dimension_numbers<[1], [0], [0], [1], [0, 0, 1, 1], [], []>} : vector<32x4xbf16>, vector<4x384xbf16>, vector<32x384xf32> -> vector<32x384xf32>
    %24 = arith.addf %18, %23 : vector<32x384xf32>
    %c4 = arith.constant 4 : index
    %c0_23 = arith.constant 0 : index
    %c0_24 = arith.constant 0 : index
    %25 = vector.load %arg2[%c4, %c0_23, %c0_24] : memref<9x32x4xbf16, #tpu.memory_space<vmem>>, vector<1x32x4xbf16>
    %26 = vector.shape_cast %25 : vector<1x32x4xbf16> to vector<32x4xbf16>
    %c0_25 = arith.constant 0 : index
    %c0_26 = arith.constant 0 : index
    %c19 = arith.constant 19 : index
    %27 = vector.load %arg1[%c0_25, %c0_26, %c19] : memref<1x4x512xbf16, #tpu.memory_space<vmem>>, vector<1x4x384xbf16>
    %28 = vector.shape_cast %27 : vector<1x4x384xbf16> to vector<4x384xbf16>
    %cst_27 = arith.constant dense<0.000000e+00> : vector<32x384xf32>
    %29 = tpu.matmul %26, %28, %cst_27 {dimension_numbers = #tpu.dot_dimension_numbers<[1], [0], [0], [1], [0, 0, 1, 1], [], []>} : vector<32x4xbf16>, vector<4x384xbf16>, vector<32x384xf32> -> vector<32x384xf32>
    %30 = arith.addf %24, %29 : vector<32x384xf32>
    %c5 = arith.constant 5 : index
    %c0_28 = arith.constant 0 : index
    %c0_29 = arith.constant 0 : index
    %31 = vector.load %arg2[%c5, %c0_28, %c0_29] : memref<9x32x4xbf16, #tpu.memory_space<vmem>>, vector<1x32x4xbf16>
    %32 = vector.shape_cast %31 : vector<1x32x4xbf16> to vector<32x4xbf16>
    %c0_30 = arith.constant 0 : index
    %c0_31 = arith.constant 0 : index
    %c20 = arith.constant 20 : index
    %33 = vector.load %arg1[%c0_30, %c0_31, %c20] : memref<1x4x512xbf16, #tpu.memory_space<vmem>>, vector<1x4x384xbf16>
    %34 = vector.shape_cast %33 : vector<1x4x384xbf16> to vector<4x384xbf16>
    %cst_32 = arith.constant dense<0.000000e+00> : vector<32x384xf32>
    %35 = tpu.matmul %32, %34, %cst_32 {dimension_numbers = #tpu.dot_dimension_numbers<[1], [0], [0], [1], [0, 0, 1, 1], [], []>} : vector<32x4xbf16>, vector<4x384xbf16>, vector<32x384xf32> -> vector<32x384xf32>
    %36 = arith.addf %30, %35 : vector<32x384xf32>
    %c6 = arith.constant 6 : index
    %c0_33 = arith.constant 0 : index
    %c0_34 = arith.constant 0 : index
    %37 = vector.load %arg2[%c6, %c0_33, %c0_34] : memref<9x32x4xbf16, #tpu.memory_space<vmem>>, vector<1x32x4xbf16>
    %38 = vector.shape_cast %37 : vector<1x32x4xbf16> to vector<32x4xbf16>
    %c0_35 = arith.constant 0 : index
    %c0_36 = arith.constant 0 : index
    %c36 = arith.constant 36 : index
    %39 = vector.load %arg1[%c0_35, %c0_36, %c36] : memref<1x4x512xbf16, #tpu.memory_space<vmem>>, vector<1x4x384xbf16>
    %40 = vector.shape_cast %39 : vector<1x4x384xbf16> to vector<4x384xbf16>
    %cst_37 = arith.constant dense<0.000000e+00> : vector<32x384xf32>
    %41 = tpu.matmul %38, %40, %cst_37 {dimension_numbers = #tpu.dot_dimension_numbers<[1], [0], [0], [1], [0, 0, 1, 1], [], []>} : vector<32x4xbf16>, vector<4x384xbf16>, vector<32x384xf32> -> vector<32x384xf32>
    %42 = arith.addf %36, %41 : vector<32x384xf32>
    %c7 = arith.constant 7 : index
    %c0_38 = arith.constant 0 : index
    %c0_39 = arith.constant 0 : index
    %43 = vector.load %arg2[%c7, %c0_38, %c0_39] : memref<9x32x4xbf16, #tpu.memory_space<vmem>>, vector<1x32x4xbf16>
    %44 = vector.shape_cast %43 : vector<1x32x4xbf16> to vector<32x4xbf16>
    %c0_40 = arith.constant 0 : index
    %c0_41 = arith.constant 0 : index
    %c37 = arith.constant 37 : index
    %45 = vector.load %arg1[%c0_40, %c0_41, %c37] : memref<1x4x512xbf16, #tpu.memory_space<vmem>>, vector<1x4x384xbf16>
    %46 = vector.shape_cast %45 : vector<1x4x384xbf16> to vector<4x384xbf16>
    %cst_42 = arith.constant dense<0.000000e+00> : vector<32x384xf32>
    %47 = tpu.matmul %44, %46, %cst_42 {dimension_numbers = #tpu.dot_dimension_numbers<[1], [0], [0], [1], [0, 0, 1, 1], [], []>} : vector<32x4xbf16>, vector<4x384xbf16>, vector<32x384xf32> -> vector<32x384xf32>
    %48 = arith.addf %42, %47 : vector<32x384xf32>
    %c8 = arith.constant 8 : index
    %c0_43 = arith.constant 0 : index
    %c0_44 = arith.constant 0 : index
    %49 = vector.load %arg2[%c8, %c0_43, %c0_44] : memref<9x32x4xbf16, #tpu.memory_space<vmem>>, vector<1x32x4xbf16>
    %50 = vector.shape_cast %49 : vector<1x32x4xbf16> to vector<32x4xbf16>
    %c0_45 = arith.constant 0 : index
    %c0_46 = arith.constant 0 : index
    %c38 = arith.constant 38 : index
    %51 = vector.load %arg1[%c0_45, %c0_46, %c38] : memref<1x4x512xbf16, #tpu.memory_space<vmem>>, vector<1x4x384xbf16>
    %52 = vector.shape_cast %51 : vector<1x4x384xbf16> to vector<4x384xbf16>
    %cst_47 = arith.constant dense<0.000000e+00> : vector<32x384xf32>
    %53 = tpu.matmul %50, %52, %cst_47 {dimension_numbers = #tpu.dot_dimension_numbers<[1], [0], [0], [1], [0, 0, 1, 1], [], []>} : vector<32x4xbf16>, vector<4x384xbf16>, vector<32x384xf32> -> vector<32x384xf32>
    %54 = arith.addf %48, %53 : vector<32x384xf32>
    %c0_48 = arith.constant 0 : index
    %c0_49 = arith.constant 0 : index
    %55 = vector.load %arg3[%c0_48, %c0_49] : memref<32x1xf32, #tpu.memory_space<vmem>>, vector<32x1xf32>
    %56 = vector.broadcast %55 : vector<32x1xf32> to vector<32x384xf32>
    %57 = arith.addf %54, %56 : vector<32x384xf32>
    %c0_50 = arith.constant 0 : index
    %c0_51 = arith.constant 0 : index
    %58 = vector.load %arg6[%c0_50, %c0_51] : memref<1x384xf32, #tpu.memory_space<vmem>>, vector<1x384xf32>
    %59 = vector.broadcast %58 : vector<1x384xf32> to vector<32x384xf32>
    %60 = arith.mulf %57, %59 : vector<32x384xf32>
    %cst_52 = arith.constant 0.000000e+00 : bf16
    %61 = vector.broadcast %cst_52 : bf16 to vector<32x128xbf16>
    %c0_53 = arith.constant 0 : index
    %c0_54 = arith.constant 0 : index
    %62 = vector.load %arg8[%c0_53, %c0_54] : memref<32x640xbf16, #tpu.memory_space<vmem>>, vector<32x128xbf16>
    tpu.vector_store %arg8[%c0_53, %c0_54], %61 {strides = array<i32>} : memref<32x640xbf16, #tpu.memory_space<vmem>>, vector<32x128xbf16>,
    %63 = arith.truncf %60 : vector<32x384xf32> to vector<32x384xbf16>
    %c0_55 = arith.constant 0 : index
    %c128 = arith.constant 128 : index
    %64 = vector.load %arg8[%c0_55, %c128] : memref<32x640xbf16, #tpu.memory_space<vmem>>, vector<32x384xbf16>
    tpu.vector_store %arg8[%c0_55, %c128], %63 {strides = array<i32>} : memref<32x640xbf16, #tpu.memory_space<vmem>>, vector<32x384xbf16>,
    %cst_56 = arith.constant 0.000000e+00 : bf16
    %65 = vector.broadcast %cst_56 : bf16 to vector<32x128xbf16>
    %c0_57 = arith.constant 0 : index
    %c512 = arith.constant 512 : index
    %66 = vector.load %arg8[%c0_57, %c512] : memref<32x640xbf16, #tpu.memory_space<vmem>>, vector<32x128xbf16>
    tpu.vector_store %arg8[%c0_57, %c512], %65 {strides = array<i32>} : memref<32x640xbf16, #tpu.memory_space<vmem>>, vector<32x128xbf16>,
    %cst_58 = arith.constant 0.000000e+00 : f32
    %67 = vector.broadcast %cst_58 : f32 to vector<4x384xf32>
    %c0_59 = arith.constant 0 : index
    %c0_60 = arith.constant 0 : index
    %c0_61 = arith.constant 0 : index
    %68 = vector.load %arg4[%c0_59, %c0_60, %c0_61] : memref<9x4x32xbf16, #tpu.memory_space<vmem>>, vector<1x4x32xbf16>
    %69 = vector.shape_cast %68 : vector<1x4x32xbf16> to vector<4x32xbf16>
    %c0_62 = arith.constant 0 : index
    %c109 = arith.constant 109 : index
    %70 = vector.load %arg8[%c0_62, %c109] : memref<32x640xbf16, #tpu.memory_space<vmem>>, vector<32x384xbf16>
    %cst_63 = arith.constant dense<0.000000e+00> : vector<4x384xf32>
    %71 = tpu.matmul %69, %70, %cst_63 {dimension_numbers = #tpu.dot_dimension_numbers<[1], [0], [0], [1], [0, 0, 1, 1], [], []>} : vector<4x32xbf16>, vector<32x384xbf16>, vector<4x384xf32> -> vector<4x384xf32>
    %72 = arith.addf %67, %71 : vector<4x384xf32>
    %c1_64 = arith.constant 1 : index
    %c0_65 = arith.constant 0 : index
    %c0_66 = arith.constant 0 : index
    %73 = vector.load %arg4[%c1_64, %c0_65, %c0_66] : memref<9x4x32xbf16, #tpu.memory_space<vmem>>, vector<1x4x32xbf16>
    %74 = vector.shape_cast %73 : vector<1x4x32xbf16> to vector<4x32xbf16>
    %c0_67 = arith.constant 0 : index
    %c110 = arith.constant 110 : index
    %75 = vector.load %arg8[%c0_67, %c110] : memref<32x640xbf16, #tpu.memory_space<vmem>>, vector<32x384xbf16>
    %cst_68 = arith.constant dense<0.000000e+00> : vector<4x384xf32>
    %76 = tpu.matmul %74, %75, %cst_68 {dimension_numbers = #tpu.dot_dimension_numbers<[1], [0], [0], [1], [0, 0, 1, 1], [], []>} : vector<4x32xbf16>, vector<32x384xbf16>, vector<4x384xf32> -> vector<4x384xf32>
    %77 = arith.addf %72, %76 : vector<4x384xf32>
    %c2_69 = arith.constant 2 : index
    %c0_70 = arith.constant 0 : index
    %c0_71 = arith.constant 0 : index
    %78 = vector.load %arg4[%c2_69, %c0_70, %c0_71] : memref<9x4x32xbf16, #tpu.memory_space<vmem>>, vector<1x4x32xbf16>
    %79 = vector.shape_cast %78 : vector<1x4x32xbf16> to vector<4x32xbf16>
    %c0_72 = arith.constant 0 : index
    %c111 = arith.constant 111 : index
    %80 = vector.load %arg8[%c0_72, %c111] : memref<32x640xbf16, #tpu.memory_space<vmem>>, vector<32x384xbf16>
    %cst_73 = arith.constant dense<0.000000e+00> : vector<4x384xf32>
    %81 = tpu.matmul %79, %80, %cst_73 {dimension_numbers = #tpu.dot_dimension_numbers<[1], [0], [0], [1], [0, 0, 1, 1], [], []>} : vector<4x32xbf16>, vector<32x384xbf16>, vector<4x384xf32> -> vector<4x384xf32>
    %82 = arith.addf %77, %81 : vector<4x384xf32>
    %c3_74 = arith.constant 3 : index
    %c0_75 = arith.constant 0 : index
    %c0_76 = arith.constant 0 : index
    %83 = vector.load %arg4[%c3_74, %c0_75, %c0_76] : memref<9x4x32xbf16, #tpu.memory_space<vmem>>, vector<1x4x32xbf16>
    %84 = vector.shape_cast %83 : vector<1x4x32xbf16> to vector<4x32xbf16>
    %c0_77 = arith.constant 0 : index
    %c127 = arith.constant 127 : index
    %85 = vector.load %arg8[%c0_77, %c127] : memref<32x640xbf16, #tpu.memory_space<vmem>>, vector<32x384xbf16>
    %cst_78 = arith.constant dense<0.000000e+00> : vector<4x384xf32>
    %86 = tpu.matmul %84, %85, %cst_78 {dimension_numbers = #tpu.dot_dimension_numbers<[1], [0], [0], [1], [0, 0, 1, 1], [], []>} : vector<4x32xbf16>, vector<32x384xbf16>, vector<4x384xf32> -> vector<4x384xf32>
    %87 = arith.addf %82, %86 : vector<4x384xf32>
    %c4_79 = arith.constant 4 : index
    %c0_80 = arith.constant 0 : index
    %c0_81 = arith.constant 0 : index
    %88 = vector.load %arg4[%c4_79, %c0_80, %c0_81] : memref<9x4x32xbf16, #tpu.memory_space<vmem>>, vector<1x4x32xbf16>
    %89 = vector.shape_cast %88 : vector<1x4x32xbf16> to vector<4x32xbf16>
    %c0_82 = arith.constant 0 : index
    %c128_83 = arith.constant 128 : index
    %90 = vector.load %arg8[%c0_82, %c128_83] : memref<32x640xbf16, #tpu.memory_space<vmem>>, vector<32x384xbf16>
    %cst_84 = arith.constant dense<0.000000e+00> : vector<4x384xf32>
    %91 = tpu.matmul %89, %90, %cst_84 {dimension_numbers = #tpu.dot_dimension_numbers<[1], [0], [0], [1], [0, 0, 1, 1], [], []>} : vector<4x32xbf16>, vector<32x384xbf16>, vector<4x384xf32> -> vector<4x384xf32>
    %92 = arith.addf %87, %91 : vector<4x384xf32>
    %c5_85 = arith.constant 5 : index
    %c0_86 = arith.constant 0 : index
    %c0_87 = arith.constant 0 : index
    %93 = vector.load %arg4[%c5_85, %c0_86, %c0_87] : memref<9x4x32xbf16, #tpu.memory_space<vmem>>, vector<1x4x32xbf16>
    %94 = vector.shape_cast %93 : vector<1x4x32xbf16> to vector<4x32xbf16>
    %c0_88 = arith.constant 0 : index
    %c129 = arith.constant 129 : index
    %95 = vector.load %arg8[%c0_88, %c129] : memref<32x640xbf16, #tpu.memory_space<vmem>>, vector<32x384xbf16>
    %cst_89 = arith.constant dense<0.000000e+00> : vector<4x384xf32>
    %96 = tpu.matmul %94, %95, %cst_89 {dimension_numbers = #tpu.dot_dimension_numbers<[1], [0], [0], [1], [0, 0, 1, 1], [], []>} : vector<4x32xbf16>, vector<32x384xbf16>, vector<4x384xf32> -> vector<4x384xf32>
    %97 = arith.addf %92, %96 : vector<4x384xf32>
    %c6_90 = arith.constant 6 : index
    %c0_91 = arith.constant 0 : index
    %c0_92 = arith.constant 0 : index
    %98 = vector.load %arg4[%c6_90, %c0_91, %c0_92] : memref<9x4x32xbf16, #tpu.memory_space<vmem>>, vector<1x4x32xbf16>
    %99 = vector.shape_cast %98 : vector<1x4x32xbf16> to vector<4x32xbf16>
    %c0_93 = arith.constant 0 : index
    %c145 = arith.constant 145 : index
    %100 = vector.load %arg8[%c0_93, %c145] : memref<32x640xbf16, #tpu.memory_space<vmem>>, vector<32x384xbf16>
    %cst_94 = arith.constant dense<0.000000e+00> : vector<4x384xf32>
    %101 = tpu.matmul %99, %100, %cst_94 {dimension_numbers = #tpu.dot_dimension_numbers<[1], [0], [0], [1], [0, 0, 1, 1], [], []>} : vector<4x32xbf16>, vector<32x384xbf16>, vector<4x384xf32> -> vector<4x384xf32>
    %102 = arith.addf %97, %101 : vector<4x384xf32>
    %c7_95 = arith.constant 7 : index
    %c0_96 = arith.constant 0 : index
    %c0_97 = arith.constant 0 : index
    %103 = vector.load %arg4[%c7_95, %c0_96, %c0_97] : memref<9x4x32xbf16, #tpu.memory_space<vmem>>, vector<1x4x32xbf16>
    %104 = vector.shape_cast %103 : vector<1x4x32xbf16> to vector<4x32xbf16>
    %c0_98 = arith.constant 0 : index
    %c146 = arith.constant 146 : index
    %105 = vector.load %arg8[%c0_98, %c146] : memref<32x640xbf16, #tpu.memory_space<vmem>>, vector<32x384xbf16>
    %cst_99 = arith.constant dense<0.000000e+00> : vector<4x384xf32>
    %106 = tpu.matmul %104, %105, %cst_99 {dimension_numbers = #tpu.dot_dimension_numbers<[1], [0], [0], [1], [0, 0, 1, 1], [], []>} : vector<4x32xbf16>, vector<32x384xbf16>, vector<4x384xf32> -> vector<4x384xf32>
    %107 = arith.addf %102, %106 : vector<4x384xf32>
    %c8_100 = arith.constant 8 : index
    %c0_101 = arith.constant 0 : index
    %c0_102 = arith.constant 0 : index
    %108 = vector.load %arg4[%c8_100, %c0_101, %c0_102] : memref<9x4x32xbf16, #tpu.memory_space<vmem>>, vector<1x4x32xbf16>
    %109 = vector.shape_cast %108 : vector<1x4x32xbf16> to vector<4x32xbf16>
    %c0_103 = arith.constant 0 : index
    %c147 = arith.constant 147 : index
    %110 = vector.load %arg8[%c0_103, %c147] : memref<32x640xbf16, #tpu.memory_space<vmem>>, vector<32x384xbf16>
    %cst_104 = arith.constant dense<0.000000e+00> : vector<4x384xf32>
    %111 = tpu.matmul %109, %110, %cst_104 {dimension_numbers = #tpu.dot_dimension_numbers<[1], [0], [0], [1], [0, 0, 1, 1], [], []>} : vector<4x32xbf16>, vector<32x384xbf16>, vector<4x384xf32> -> vector<4x384xf32>
    %112 = arith.addf %107, %111 : vector<4x384xf32>
    %c0_105 = arith.constant 0 : index
    %c0_106 = arith.constant 0 : index
    %113 = vector.load %arg5[%c0_105, %c0_106] : memref<4x1xf32, #tpu.memory_space<vmem>>, vector<4x1xf32>
    %114 = vector.broadcast %113 : vector<4x1xf32> to vector<4x384xf32>
    %115 = arith.addf %112, %114 : vector<4x384xf32>
    %116 = arith.negf %115 : vector<4x384xf32>
    %117 = math.exp %116 : vector<4x384xf32>
    %cst_107 = arith.constant 1.000000e+00 : f32
    %118 = vector.broadcast %cst_107 : f32 to vector<4x384xf32>
    %119 = arith.addf %118, %117 : vector<4x384xf32>
    %120 = arith.divf %118, %119 : vector<4x384xf32>
    %121 = arith.mulf %115, %120 : vector<4x384xf32>
    %c0_108 = arith.constant 0 : index
    %c0_109 = arith.constant 0 : index
    %c0_110 = arith.constant 0 : index
    %122 = vector.load %arg7[%c0_108, %c0_109, %c0_110] : memref<1x4x384xf32, #tpu.memory_space<vmem>>, vector<1x4x384xf32>
    %123 = vector.shape_cast %122 : vector<1x4x384xf32> to vector<4x384xf32>
    %124 = vector.shape_cast %121 : vector<4x384xf32> to vector<1x4x384xf32>
    tpu.vector_store %arg7[%c0_108, %c0_109, %c0_110], %124 {strides = array<i32>} : memref<1x4x384xf32, #tpu.memory_space<vmem>>, vector<1x4x384xf32>,
    return
  }
  func.func @transform_0(%arg0: i32) -> (i32, i32, i32) {
    %c0_i32 = arith.constant 0 : i32
    %c0_i32_0 = arith.constant 0 : i32
    %c0_i32_1 = arith.constant 0 : i32
    return %arg0, %c0_i32, %c0_i32_0 : i32, i32, i32
  }
  func.func @transform_1(%arg0: i32) -> (i32, i32, i32) {
    %c0_i32 = arith.constant 0 : i32
    %c0_i32_0 = arith.constant 0 : i32
    %c0_i32_1 = arith.constant 0 : i32
    %c0_i32_2 = arith.constant 0 : i32
    return %c0_i32, %c0_i32_0, %c0_i32_1 : i32, i32, i32
  }
  func.func @transform_2(%arg0: i32) -> (i32, i32) {
    %c0_i32 = arith.constant 0 : i32
    %c0_i32_0 = arith.constant 0 : i32
    %c0_i32_1 = arith.constant 0 : i32
    return %c0_i32, %c0_i32_0 : i32, i32
  }
  func.func @transform_3(%arg0: i32) -> (i32, i32, i32) {
    %c0_i32 = arith.constant 0 : i32
    %c0_i32_0 = arith.constant 0 : i32
    %c0_i32_1 = arith.constant 0 : i32
    %c0_i32_2 = arith.constant 0 : i32
    return %c0_i32, %c0_i32_0, %c0_i32_1 : i32, i32, i32
  }
  func.func @transform_4(%arg0: i32) -> (i32, i32) {
    %c0_i32 = arith.constant 0 : i32
    %c0_i32_0 = arith.constant 0 : i32
    %c0_i32_1 = arith.constant 0 : i32
    return %c0_i32, %c0_i32_0 : i32, i32
  }
  func.func @transform_5(%arg0: i32) -> (i32, i32) {
    %c0_i32 = arith.constant 0 : i32
    %c0_i32_0 = arith.constant 0 : i32
    %c0_i32_1 = arith.constant 0 : i32
    return %c0_i32, %c0_i32_0 : i32, i32
  }
  func.func @transform_6(%arg0: i32) -> (i32, i32, i32) {
    %c0_i32 = arith.constant 0 : i32
    %c0_i32_0 = arith.constant 0 : i32
    %c0_i32_1 = arith.constant 0 : i32
    return %arg0, %c0_i32, %c0_i32_0 : i32, i32, i32
  }
}

</mosaic_0001>

<bundles_post_ra>
// kernel: conv_block_forward.1
= control target key start
LH: loop header
LB: loop body
LE: loop exit
PB: predicated region body
PF: predicated region fallthrough
CT: control target
= control target key end

     0   :  { %s3595_s21 = smov 0   ;;  %s4087_s0 = inlined_call_operand.vmem [shape: bf16[2,4,512], index: 0, kind: input, shape index: {}]   ;;  %s4088_s1 = inlined_call_operand.vmem [shape: bf16[9,32,4], index: 1, kind: input, shape index: {}]   ;;  %s4089_s2 = inlined_call_operand.vmem [shape: f32[32,1], index: 2, kind: input, shape index: {}]   ;;  %s4090_s3 = inlined_call_operand.vmem [shape: bf16[9,4,32], index: 3, kind: input, shape index: {}]   ;;  %s4091_s4 = inlined_call_operand.vmem [shape: f32[4,1], index: 4, kind: input, shape index: {}]   ;;  %s4092_s5 = inlined_call_operand.vmem [shape: f32[1,384], index: 5, kind: input, shape index: {}]   ;;  %s4093_s6 = inlined_call_operand.vmem [shape: f32[2,4,384], index: 6, kind: output, shape index: {}]  }
   0x1 LB: > { %s3020_s22 = sadd.s32 4294967295, %s3541_s21   ;;  %p3024_p0 = scmp.ge.s32.totalorder %s3541_s21, 1  ;;  %s3541_s21 = sphi %s3595_s21, %s16_s21  }
   0x2   : > { %p212_p1 = scmp.lt.s32.totalorder %s3541_s21, 3 }
   0x4   : > { %p213_p2 = pnand %p3024_p0, %p212_p1 }
   0x5   : > { %p242_p3 = scmp.lt.s32.totalorder (!%p213_p2), %s3020_s22, 1  ;;  %v279_v0 = vlaneseq (!%p213_p2)  ;;  %v3543_v1 = vmov (!%p213_p2), 1983009808   ;;  %v3610_v5 = vld [vmem:[%s4088_s1 + $0x10] sm:$0xff] (!%p213_p2)   ;;  %v3544_v6 = vmov (!%p213_p2), 0   ;;  %vm304_vm0 = vcmask (!%p213_p2), 31744  }
   0x6   : > { %216 = sbr.rel (%p213_p2) target bundleno = 966 (0x3c6), region = 44  ;;  %v277_v2 = vunpack.c.l.s4 (!%p213_p2), %v3543_v1  ;;  %353 = vmatprep.mubr.bf16.mxu0 (!%p213_p2), %v3544_v6  ;;  %3467 = vset.pattern.permute.xlu1 (!%p213_p2), %v3544_v6  ;;  %s3545_s29 = smov (!%p213_p2), 127   ;;  %vm300_vm1 = vcmask (!%p213_p2), 1039360   ;;  %vm311_vm2 = vcmask (!%p213_p2), 1041408   ;;  %vm609_vm3 = vcmask (!%p213_p2), 1031168   ;;  %v3505_v34 = vld [vmem:[%s4088_s1 + $0x18] sm:$0xff] (!%p213_p2)  }
   0x7   : > { %v3605_v3 = vshrl.u32 (!%p213_p2), %v279_v0, 7  ;;  %3211 = vmatprep.mubr.msk.bf16.mxu1 (!%p213_p2), %vm304_vm0, %v3610_v5  ;;  %3466 = vset.pattern.permute.xlu0 (!%p213_p2), %v3544_v6  ;;  %s3546_s30 = smov (!%p213_p2), 126   ;;  %s3547_s7 = smov (!%p213_p2), 110   ;;  %v3507_v38 = vld [vmem:[%s4088_s1] sm:$0xff] (!%p213_p2)   ;;  %v1793_v39 = vld [vmem:[%s4089_s2 + $0x8] sm:$0xff] (!%p213_p2)  ;;  %v1794_v43 = vld [vmem:[%s4089_s2 + $0x10] sm:$0xff] (!%p213_p2) }
   0x8   : > { %v278_v4 = vunpack.c.0.s8 (!%p213_p2), %v277_v2  ;;  %s3548_s8 = smov (!%p213_p2), 109   ;;  %s3549_s9 = smov (!%p213_p2), 108   ;;  %v1792_v40 = vld [vmem:[%s4089_s2] sm:$0xff] (!%p213_p2)  ;;  %vm784_vm4 = vcmask (!%p213_p2), 900096   ;;  %v1795_v45 = vld [vmem:[%s4089_s2 + $0x18] sm:$0xff] (!%p213_p2)  ;;  %v3508_v50 = vld [vmem:[%s4088_s1 + $0x8] sm:$0xff] (!%p213_p2)  }
   0x9   : > { %s3550_s10 = smov (!%p213_p2), 92   ;;  %s3551_s11 = smov (!%p213_p2), 91   ;;  %v3509_v52 = vld [vmem:[%s4088_s1 + $0x20] sm:$0xff] (!%p213_p2)   ;;  %vm959_vm5 = vcmask (!%p213_p2), 891904   ;;  %v3510_v60 = vld [vmem:[%s4088_s1 + $0x28] sm:$0xff] (!%p213_p2)   ;;  %v3511_v1 = vld [vmem:[%s4088_s1 + $0x30] sm:$0xff] (!%p213_p2)  }
   0xa   : > { %v281_v7 = vsub.s32 (!%p213_p2), %v278_v4, %v3605_v3  ;;  %s3552_s12 = smov (!%p213_p2), 90   ;;  %vm1134_vm6 = vcmask (!%p213_p2), 883712   ;;  %vm1309_vm7 = vcmask (!%p213_p2), 752640   ;;  %vm1484_vm8 = vcmask (!%p213_p2), 744448   ;;  %s3553_s17 = smov (!%p213_p2), 18  }
   0xb   : > { %vm1659_vm9 = vcmask (!%p213_p2), 736256   ;;  %vm3555_vm10 = vmmov (!%p213_p2), 0   ;;  %s3556_s20 = smov (!%p213_p2), 19   ;;  %s3557_s23 = smov (!%p213_p2), 17   ;;  %vm1921_vm11 = vcmask (!%p213_p2), 261120   ;;  %vm1908_vm12 = vcmask (!%p213_p2), 146432  }
   0xc   : > { %s3558_s24 = smov (!%p213_p2), 1   ;;  %s3559_s27 = smov (!%p213_p2), 111   ;;  %vm2022_vm13 = vcmask (!%p213_p2), 154624   ;;  %vm2137_vm14 = vcmask (!%p213_p2), 138240   ;;  %vm2255_vm15 = vcmask (!%p213_p2), 7168  }
   0xd   : > { %s4095_s22 = smov (!%p242_p3, %s3020_s22), 1 }
   0xe   : > { %s3154_s25 = sshll.u32 %s4095_s22, 3 }
   0xf   : > { %s246_s28 = scalar_lea.vmem %s4087_s0, %s3154_s25 }
  0x10   : > { %v263_v8 = vld [vmem:[%s246_s28] sm:$0xff] }
  0x11   : > { %v257_v9 = vld [vmem:[%s246_s28] sm:$0x3f]  ;;  %v282_v10 = vrot.slane %v263_v8, %v281_v7  ;;  %v275_v11 = vcombine.high %v263_v8, %v263_v8 }
  0x12   : > { %v441_v12 = vrot.slane %v257_v9, %v281_v7  ;;  %v434_v16 = vcombine.high %v257_v9, %v257_v9  ;;  %v3513_v8 = vld [vmem:[%s4088_s1 + $0x40] sm:$0xff]  }
  0x13   : > { %292 = vrot.lane.b32.xlu0 %v282_v10, %s3545_s29  ;;  %v290_v13 = vcombine.high %v282_v10, %v282_v10  ;;  %v289_v14 = vrot.slane %v275_v11, %v281_v7 }
  0x14   : > { %v3625_v17 = vrot.slane %v434_v16, %v281_v7  ;;  %v449_v21 = vcombine.high %v441_v12, %v441_v12  ;;  %v457_v27 = vsel %vm311_vm2, %v441_v12, 0 }
  0x15   : > { %296 = vrot.lane.b32.xlu1 %v289_v14, %s3545_s29  ;;  %v291_v15 = vcombine.high %v289_v14, %v289_v14 }
  0x16   : > { %v463_v35 = vsel %vm311_vm2, %v3625_v17, 0 }
  0x17   : > { %294 = vrot.lane.b32.xlu0 %v290_v13, %s3545_s29 }
  0x19   : > { %601 = vrot.lane.b32.xlu1 %v282_v10, %s3546_s30 }
  0x1b   : > { %603 = vrot.lane.b32.xlu0 %v290_v13, %s3546_s30 }
  0x1d   : > { %605 = vrot.lane.b32.xlu1 %v289_v14, %s3546_s30 }
  0x1f   : > { %298 = vrot.lane.b32.xlu0 %v291_v15, %s3545_s29 }
  0x21   : > { %776 = vrot.lane.b32.xlu1 %v282_v10, %s3547_s7 }
  0x23   : > { %778 = vrot.lane.b32.xlu0 %v290_v13, %s3547_s7 }
  0x25   : > { %780 = vrot.lane.b32.xlu1 %v289_v14, %s3547_s7 }
  0x27   : > { %951 = vrot.lane.b32.xlu0 %v282_v10, %s3548_s8 }
  0x29   : > { %953 = vrot.lane.b32.xlu1 %v290_v13, %s3548_s8 }
  0x2b   : > { %955 = vrot.lane.b32.xlu0 %v289_v14, %s3548_s8 }
  0x2d   : > { %607 = vrot.lane.b32.xlu1 %v291_v15, %s3546_s30 }
  0x2f   : > { %1126 = vrot.lane.b32.xlu0 %v282_v10, %s3549_s9 }
  0x31   : > { %1128 = vrot.lane.b32.xlu1 %v290_v13, %s3549_s9 }
  0x33   : > { %1130 = vrot.lane.b32.xlu0 %v289_v14, %s3549_s9 }
  0x35   : > { %782 = vrot.lane.b32.xlu1 %v291_v15, %s3547_s7 }
  0x37   : > { %957 = vrot.lane.b32.xlu0 %v291_v15, %s3548_s8 }
  0x39   : > { %1301 = vrot.lane.b32.xlu1 %v282_v10, %s3550_s10 }
  0x3b   : > { %1303 = vrot.lane.b32.xlu0 %v290_v13, %s3550_s10 }
  0x3d   : > { %1305 = vrot.lane.b32.xlu1 %v289_v14, %s3550_s10 }
  0x3f   : > { %1132 = vrot.lane.b32.xlu0 %v291_v15, %s3549_s9 }
  0x41   : > { %1476 = vrot.lane.b32.xlu1 %v282_v10, %s3551_s11 }
  0x43   : > { %1478 = vrot.lane.b32.xlu0 %v290_v13, %s3551_s11 }
  0x45   : > { %1480 = vrot.lane.b32.xlu1 %v289_v14, %s3551_s11 }
  0x47   : > { %1307 = vrot.lane.b32.xlu0 %v291_v15, %s3550_s10 }
  0x49   : > { %1651 = vrot.lane.b32.xlu1 %v282_v10, %s3552_s12 }
  0x4b   : > { %1653 = vrot.lane.b32.xlu0 %v290_v13, %s3552_s12 }
  0x4d   : > { %1655 = vrot.lane.b32.xlu1 %v289_v14, %s3552_s12 }
  0x4f   : > { %1482 = vrot.lane.b32.xlu0 %v291_v15, %s3551_s11 }
  0x51   : > { %1657 = vrot.lane.b32.xlu1 %v291_v15, %s3552_s12 }
  0x53   : > { %1798 = vperm.xlu0 %3466, %v1792_v40  }
  0x55   : > { %1803 = vperm.xlu1 %3467, %v1793_v39  }
  0x57   : > { %1813 = vperm.xlu0 %3466, %v1795_v45  }
  0x59   : > { %1808 = vperm.xlu1 %3467, %v1794_v43   ;;  %v3520_v43 = vld [vmem:[%s4088_s1 + $0x78] sm:$0xff]  }
  0x5d   : > { %3469 = vrot.lane.b32.xlu1 %v3544_v6, %s3553_s17 }
  0x85   : > { %v293_v18 = vpop.permute.xlu0 %292 }
  0x87   : > { %v297_v19 = vpop.permute.xlu1 %296 }
  0x89   : > { %v295_v20 = vpop.permute.xlu0 %294 }
  0x8a   : > { %v302_v22 = vsel %vm300_vm1, %v295_v20, %v297_v19  ;;  %v301_v23 = vsel %vm300_vm1, %v293_v18, %v295_v20 }
  0x8b   : > { %3034 = vmatprep.subr.msk.bf16.mxu0 %vm311_vm2, %v302_v22  ;;  %v602_v24 = vpop.permute.xlu1 %601  ;;  %v313_v25 = vsel %vm311_vm2, %v301_v23, 0 }
  0x8c   : > { %322 = vmatpush1.bf16.msra.mxu0 %v313_v25 }
  0x8d   : > { %v604_v26 = vpop.permute.xlu0 %603  ;;  %3041 = vmatprep.subr.msk.bf16.mxu0 %vm311_vm2, %v449_v21  ;;  %v3515_v21 = vld [vmem:[%s4088_s1 + $0x50] sm:$0xff]  }
  0x8e   : > { %v610_v42 = vsel %vm609_vm3, %v602_v24, %v604_v26 }
  0x8f   : > { %3035 = vmatmul.mubr.msk.bf16.vlgmr.msra.gmra.mrb[0].mxu0 %vm304_vm0, %v3610_v5  ;;  %v606_v28 = vpop.permute.xlu1 %605  ;;  %v620_v46 = vsel %vm311_vm2, %v610_v42, 0  ;;  %v3512_v5 = vld [vmem:[%s4088_s1 + $0x38] sm:$0xff]  }
  0x90   : > { %v611_v29 = vsel %vm609_vm3, %v604_v26, %v606_v28  ;;  %466 = vmatpush1.bf16.msra.mxu0 %v457_v27  ;;  %363 = vmatprep.mubr.bf16.mxu0 %v3544_v6 }
  0x91   : > { %v299_v30 = vpop.permute.xlu0 %298  ;;  %3052 = vmatprep.subr.msk.bf16.mxu0 %vm311_vm2, %v611_v29 }
  0x92   : > { %v303_v31 = vsel %vm300_vm1, %v297_v19, %v299_v30  ;;  %v3517_v30 = vld [vmem:[%s4088_s1 + $0x60] sm:$0xff]  }
  0x93   : > { %v777_v32 = vpop.permute.xlu1 %776  ;;  %3431 = vmatprep.subr.msk.bf16.mxu1 %vm311_vm2, %v303_v31  ;;  %v319_v33 = vsel %vm311_vm2, %v303_v31, 0 }
  0x94   : > { %3210 = vmatpush3.bf16.msra.mxu1 %v319_v33 }
  0x95   : > { %3432 = vmatprep.subr.msk.bf16.mxu1 %vm311_vm2, %v3625_v17  ;;  %v779_v36 = vpop.permute.xlu0 %778  ;;  %v3514_v17 = vld [vmem:[%s4088_s1 + $0x48] sm:$0xff]  }
  0x96   : > { %v785_v59 = vsel %vm784_vm4, %v777_v32, %v779_v36 }
  0x97   : > { %3036 = vmatmul.mubr.msk.bf16.gmra.mrb[4].mxu0 %vm304_vm0, %v3505_v34  ;;  %v781_v37 = vpop.permute.xlu1 %780  ;;  %3212 = vmatmul.mubr.msk.bf16.vlgmr.msra.gmra.mrb[0].mxu1 %vm304_vm0, %v3505_v34  ;;  %v795_v62 = vsel %vm311_vm2, %v785_v59, 0 }
  0x98   : > { %497 = vmatprep.mubr.bf16.mxu0 %v3544_v6  ;;  %3216 = vmatpush3.bf16.msra.mxu1 %v463_v35  ;;  %v786_v48 = vsel %vm784_vm4, %v779_v36, %v781_v37  ;;  %v3518_v36 = vld [vmem:[%s4088_s1 + $0x68] sm:$0xff]  }
  0x99   : > { %3217 = vmatprep.mubr.msk.bf16.mxu1 %vm304_vm0, %v3507_v38  ;;  %v952_v41 = vpop.permute.xlu0 %951 }
  0x9b   : > { %v954_v44 = vpop.permute.xlu1 %953 }
  0x9c   : > { %v960_v10 = vsel %vm959_vm5, %v952_v41, %v954_v44  ;;  %v3519_v41 = vld [vmem:[%s4088_s1 + $0x70] sm:$0xff]  }
  0x9d   : > { %v956_v47 = vpop.permute.xlu0 %955  ;;  %v970_v13 = vsel %vm311_vm2, %v960_v10, 0 }
  0x9e   : > { %v961_v0 = vsel %vm959_vm5, %v954_v44, %v956_v47  ;;  %v3521_v44 = vld [vmem:[%s4088_s1 + $0x80] sm:$0xff]  }
  0x9f   : > { %v608_v49 = vpop.permute.xlu1 %607  ;;  %3042 = vmatmul.mubr.msk.bf16.vlgmr.msra.gmra.mrb[0].mxu0 %vm304_vm0, %v3507_v38 }
  0xa0   : > { %v612_v51 = vsel %vm609_vm3, %v606_v28, %v608_v49  ;;  %629 = vmatpush1.bf16.msra.mxu0 %v620_v46  ;;  %507 = vmatprep.mubr.bf16.mxu0 %v3544_v6  ;;  %v3516_v28 = vld [vmem:[%s4088_s1 + $0x58] sm:$0xff]   ;;  %v3522_v49 = vld [vmem:[%s4088_s1 + $0x88] sm:$0xff]  }
  0xa1   : > { %v626_v53 = vsel %vm311_vm2, %v612_v51, 0  ;;  %3433 = vmatprep.subr.msk.bf16.mxu1 %vm311_vm2, %v612_v51  ;;  %3063 = vmatprep.subr.msk.bf16.mxu0 %vm311_vm2, %v786_v48  ;;  %v3691_v54 = vpop.permute.xlu0 %1126 }
  0xa3   : > { %3218 = vmatmul.mubr.msk.bf16.vlgmr.msra.gmra.mrb[0].mxu1 %vm304_vm0, %v3508_v50  ;;  %v3694_v55 = vpop.permute.xlu1 %1128 }
  0xa4   : > { %3222 = vmatpush3.bf16.msra.mxu1 %v626_v53  ;;  %3223 = vmatprep.mubr.msk.bf16.mxu1 %vm304_vm0, %v3509_v52  ;;  %v1135_v25 = vsel %vm1134_vm6, %v3691_v54, %v3694_v55 }
  0xa5   : > { %v1131_v56 = vpop.permute.xlu0 %1130  ;;  %v1145_v27 = vsel %vm311_vm2, %v1135_v25, 0 }
  0xa6   : > { %v1136_v15 = vsel %vm1134_vm6, %v3694_v55, %v1131_v56  ;;  %v1840_v55 = vsub.s32 2, %v3605_v3 }
  0xa7   : > { %3043 = vmatmul.mubr.msk.bf16.gmra.mrb[4].mxu0 %vm304_vm0, %v3508_v50  ;;  %v783_v57 = vpop.permute.xlu1 %782 }
  0xa8   : > { %v787_v58 = vsel %vm784_vm4, %v781_v37, %v783_v57  ;;  %660 = vmatprep.mubr.bf16.mxu0 %v3544_v6  ;;  %v1828_v57 = vld [vmem:[%s4092_s5] sm:$0x7] }
  0xa9   : > { %3434 = vmatprep.subr.msk.bf16.mxu1 %vm311_vm2, %v787_v58  ;;  %v958_v61 = vpop.permute.xlu0 %957  ;;  %v801_v63 = vsel %vm311_vm2, %v787_v58, 0 }
  0xaa   : > { %v962_v2 = vsel %vm959_vm5, %v956_v47, %v958_v61  ;;  %v1841_v61 = vrot.slane %v1828_v57, %v1840_v55 }
  0xab   : > { %v976_v9 = vsel %vm311_vm2, %v962_v2, 0  ;;  %v1302_v12 = vpop.permute.xlu1 %1301 }
  0xad   : > { %v1304_v4 = vpop.permute.xlu0 %1303 }
  0xae   : > { %v1310_v35 = vsel %vm1309_vm7, %v1302_v12, %v1304_v4  ;;  %v1832_v12 = vsub.s32 0, %v3605_v3 }
  0xaf   : > { %3053 = vmatmul.mubr.msk.bf16.vlgmr.msra.gmra.mrb[0].mxu0 %vm304_vm0, %v3509_v52  ;;  %3224 = vmatmul.mubr.msk.bf16.vlgmr.msra.gmra.mrb[0].mxu1 %vm304_vm0, %v3510_v60  ;;  %v1306_v16 = vpop.permute.xlu1 %1305  ;;  %v1320_v38 = vsel %vm311_vm2, %v1310_v35, 0  ;;  %v3554_v52 = vmov 0.0  }
  0xb0   : > { %804 = vmatpush1.bf16.msra.mxu0 %v795_v62  ;;  %3228 = vmatpush3.bf16.msra.mxu1 %v801_v63  ;;  %v1311_v26 = vsel %vm1309_vm7, %v1304_v4, %v1306_v16 }
  0xb1   : > { %670 = vmatprep.mubr.bf16.mxu0 %v3544_v6  ;;  %3074 = vmatprep.subr.msk.bf16.mxu0 %vm311_vm2, %v961_v0  ;;  %v1133_v7 = vpop.permute.xlu0 %1132 }
  0xb2   : > { %3229 = vmatprep.mubr.msk.bf16.mxu1 %vm304_vm0, %v3511_v1  ;;  %3435 = vmatprep.subr.msk.bf16.mxu1 %vm311_vm2, %v962_v2  ;;  %v1137_v11 = vsel %vm1134_vm6, %v1131_v56, %v1133_v7 }
  0xb3   : > { %v1477_v19 = vpop.permute.xlu1 %1476  ;;  %v1151_v20 = vsel %vm311_vm2, %v1137_v11, 0 }
  0xb5   : > { %v3733_v14 = vpop.permute.xlu0 %1478 }
  0xb6   : > { %v1485_v46 = vsel %vm1484_vm8, %v1477_v19, %v3733_v14 }
  0xb7   : > { %3054 = vmatmul.mubr.msk.bf16.gmra.mrb[4].mxu0 %vm304_vm0, %v3510_v60  ;;  %v1481_v24 = vpop.permute.xlu1 %1480  ;;  %v1495_v47 = vsel %vm311_vm2, %v1485_v46, 0 }
  0xb8   : > { %835 = vmatprep.mubr.bf16.mxu0 %v3544_v6  ;;  %v1486_v39 = vsel %vm1484_vm8, %v3733_v14, %v1481_v24 }
  0xb9   : > { %v1308_v18 = vpop.permute.xlu0 %1307 }
  0xba   : > { %v1312_v22 = vsel %vm1309_vm7, %v1306_v16, %v1308_v18  ;;  %v1833_v16 = vrot.slane %v1828_v57, %v1832_v12 }
  0xbb   : > { %3230 = vmatmul.mubr.msk.bf16.vlgmr.msra.gmra.mrb[0].mxu1 %vm304_vm0, %v3512_v5  ;;  %v1652_v31 = vpop.permute.xlu1 %1651  ;;  %v1326_v32 = vsel %vm311_vm2, %v1312_v22, 0 }
  0xbc   : > { %3234 = vmatpush3.bf16.msra.mxu1 %v976_v9  ;;  %3235 = vmatprep.mubr.msk.bf16.mxu1 %vm304_vm0, %v3513_v8 }
  0xbd   : > { %3436 = vmatprep.subr.msk.bf16.mxu1 %vm311_vm2, %v1137_v11  ;;  %v1654_v23 = vpop.permute.xlu0 %1653 }
  0xbe   : > { %v1660_v50 = vsel %vm1659_vm9, %v1652_v31, %v1654_v23 }
  0xbf   : > { %3064 = vmatmul.mubr.msk.bf16.vlgmr.msra.gmra.mrb[0].mxu0 %vm304_vm0, %v3511_v1  ;;  %v1656_v34 = vpop.permute.xlu1 %1655  ;;  %v1670_v51 = vsel %vm311_vm2, %v1660_v50, 0 }
  0xc0   : > { %979 = vmatpush1.bf16.msra.mxu0 %v970_v13  ;;  %845 = vmatprep.mubr.bf16.mxu0 %v3544_v6  ;;  %v1661_v48 = vsel %vm1659_vm9, %v1654_v23, %v1656_v34  ;;  %v1836_v13 = vsub.s32 1, %v3605_v3 }
  0xc1   : > { %3085 = vmatprep.subr.msk.bf16.mxu0 %vm311_vm2, %v1136_v15  ;;  %v1483_v29 = vpop.permute.xlu0 %1482 }
  0xc2   : > { %v1487_v33 = vsel %vm1484_vm8, %v1481_v24, %v1483_v29  ;;  %v1837_v19 = vrot.slane %v1828_v57, %v1836_v13 }
  0xc3   : > { %v1658_v37 = vpop.permute.xlu1 %1657  ;;  %v1501_v40 = vsel %vm311_vm2, %v1487_v33, 0 }
  0xc4   : > { %v1662_v42 = vsel %vm1659_vm9, %v1656_v34, %v1658_v37 }
  0xc5   : > { %v1676_v45 = vsel %vm311_vm2, %v1662_v42, 0 }
  0xc7   : > { %3065 = vmatmul.mubr.msk.bf16.gmra.mrb[4].mxu0 %vm304_vm0, %v3512_v5  ;;  %3236 = vmatmul.mubr.msk.bf16.vlgmr.msra.gmra.mrb[0].mxu1 %vm304_vm0, %v3514_v17 }
  0xc8   : > { %1010 = vmatprep.mubr.bf16.mxu0 %v3544_v6  ;;  %3240 = vmatpush3.bf16.msra.mxu1 %v1151_v20 }
  0xc9   : > { %3241 = vmatprep.mubr.msk.bf16.mxu1 %vm304_vm0, %v3515_v21  ;;  %3437 = vmatprep.subr.msk.bf16.mxu1 %vm311_vm2, %v1312_v22 }
  0xcf   : > { %3075 = vmatmul.mubr.msk.bf16.vlgmr.msra.gmra.mrb[0].mxu0 %vm304_vm0, %v3513_v8 }
  0xd0   : > { %1154 = vmatpush1.bf16.msra.mxu0 %v1145_v27  ;;  %1020 = vmatprep.mubr.bf16.mxu0 %v3544_v6 }
  0xd1   : > { %3096 = vmatprep.subr.msk.bf16.mxu0 %vm311_vm2, %v1311_v26 }
  0xd2   : > { %v1799_v54 = vpop.permute.xlu0 %1798 }
  0xd3   : > { %3242 = vmatmul.mubr.msk.bf16.vlgmr.msra.gmra.mrb[0].mxu1 %vm304_vm0, %v3516_v28 }
  0xd4   : > { %3246 = vmatpush3.bf16.msra.mxu1 %v1326_v32  ;;  %3247 = vmatprep.mubr.msk.bf16.mxu1 %vm304_vm0, %v3517_v30  ;;  %v1804_v53 = vpop.permute.xlu1 %1803 }
  0xd5   : > { %3438 = vmatprep.subr.msk.bf16.mxu1 %vm311_vm2, %v1487_v33 }
  0xd6   : > { %v1814_v59 = vpop.permute.xlu0 %1813 }
  0xd7   : > { %3076 = vmatmul.mubr.msk.bf16.gmra.mrb[4].mxu0 %vm304_vm0, %v3514_v17 }
  0xd8   : > { %1185 = vmatprep.mubr.bf16.mxu0 %v3544_v6  ;;  %v1809_v56 = vpop.permute.xlu1 %1808 }
  0xdf   : > { %3086 = vmatmul.mubr.msk.bf16.vlgmr.msra.gmra.mrb[0].mxu0 %vm304_vm0, %v3515_v21  ;;  %3248 = vmatmul.mubr.msk.bf16.vlgmr.msra.gmra.mrb[0].mxu1 %vm304_vm0, %v3518_v36 }
  0xe0   : > { %1329 = vmatpush1.bf16.msra.mxu0 %v1320_v38  ;;  %1195 = vmatprep.mubr.bf16.mxu0 %v3544_v6 }
  0xe1   : > { %3107 = vmatprep.subr.msk.bf16.mxu0 %vm311_vm2, %v1486_v39  ;;  %3252 = vmatpush3.bf16.msra.mxu1 %v1501_v40 }
  0xe2   : > { %3253 = vmatprep.mubr.msk.bf16.mxu1 %vm304_vm0, %v3519_v41  ;;  %3439 = vmatprep.subr.msk.bf16.mxu1 %vm311_vm2, %v1662_v42 }
  0xe7   : > { %3087 = vmatmul.mubr.msk.bf16.gmra.mrb[4].mxu0 %vm304_vm0, %v3516_v28 }
  0xe8   : > { %1360 = vmatprep.mubr.bf16.mxu0 %v3544_v6 }
  0xeb   : > { %3254 = vmatmul.mubr.msk.bf16.vlgmr.msra.gmra.mrb[0].mxu1 %vm304_vm0, %v3520_v43 }
  0xec   : > { %3258 = vmatpush3.bf16.msra.mxu1 %v1676_v45  ;;  %3259 = vmatprep.mubr.msk.bf16.mxu1 %vm304_vm0, %v3521_v44  ;;  %v2929_v45 = vld [vmem:[%s4091_s4] sm:$0xf] }
  0xef   : > { %3097 = vmatmul.mubr.msk.bf16.vlgmr.msra.gmra.mrb[0].mxu0 %vm304_vm0, %v3517_v30 }
  0xf0   : > { %1504 = vmatpush1.bf16.msra.mxu0 %v1495_v47  ;;  %1370 = vmatprep.mubr.bf16.mxu0 %v3544_v6 }
  0xf1   : > { %3118 = vmatprep.subr.msk.bf16.mxu0 %vm311_vm2, %v1661_v48 }
  0xf7   : > { %3098 = vmatmul.mubr.msk.bf16.gmra.mrb[4].mxu0 %vm304_vm0, %v3518_v36  ;;  %3260 = vmatmul.mubr.msk.bf16.vlgmr.msra.gmra.mrb[0].mxu1 %vm304_vm0, %v3522_v49 }
  0xf8   : > { %1535 = vmatprep.mubr.bf16.mxu0 %v3544_v6  ;;  %1957 = vmatprep.mubr.bf16.mxu1 %v3544_v6 }
  0xff   : > { %3108 = vmatmul.mubr.msk.bf16.vlgmr.msra.gmra.mrb[0].mxu0 %vm304_vm0, %v3519_v41 }
 0x100   : > { %1679 = vmatpush1.bf16.msra.mxu0 %v1670_v51  ;;  %1545 = vmatprep.mubr.bf16.mxu0 %v3544_v6 }
 0x101   : > { %3295 = vmatprep.subr.bf16.mxu0 %v3554_v52 }
 0x107   : > { %3109 = vmatmul.mubr.msk.bf16.gmra.mrb[4].mxu0 %vm304_vm0, %v3520_v43  ;;  %v3888_v43 = vld [vmem:[%s4090_s3 + $0x8] sm:$0x3] }
 0x108   : > { %1710 = vmatprep.mubr.bf16.mxu0 %v3544_v6 }
 0x10f   : > { %3119 = vmatmul.mubr.msk.bf16.vlgmr.msra.gmra.mrb[0].mxu0 %vm304_vm0, %v3521_v44  ;;  %v3470_v44 = vpop.permute.xlu1 %3469 }
 0x110   : > { %1720 = vmatprep.mubr.bf16.mxu0 %v3544_v6  ;;  %v3471_v48 = vunpack.i.l.bf16 %v3470_v44  ;;  %v3472_v55 = vunpack.i.h.bf16 %v3470_v44 }
 0x117   : > { %3120 = vmatmul.mubr.msk.bf16.gmra.mrb[4].mxu0 %vm304_vm0, %v3522_v49  ;;  %vm2595_vm0 = vcmask 908288  }
 0x118   : > { %3299 = vmatprep.mubr.msk.bf16.mxu0 %vm3555_vm10, %v3554_v52 }
 0x1ca   : > { %v3261_v58 = vpop.f32.mrb[0].mxu1 }
 0x1cb   : > { %v1824_v60 = vadd.f32 %v3261_v58, %v1809_v56  ;;  %v1765_v62 = vpop.f32.mrb[1].mxu1 }
 0x1cc   : > { %v1818_v63 = vadd.f32 %v1799_v54, %v1765_v62  ;;  %v3262_v0 = vpop.f32.mrb[2].mxu1 }
 0x1cd   : > { %v1827_v1 = vadd.f32 %v3262_v0, %v1814_v59  ;;  %v1768_v2 = vpop.f32.mrb[3].mxu1  ;;  %v1853_v5 = vmul.f32 %v1841_v61, %v1824_v60  ;;  %v3123_v60 = vld [vmem:[%s4090_s3 + $0x2] sm:$0x3] }
 0x1ce   : > { %v1821_v4 = vadd.f32 %v1804_v53, %v1768_v2  ;;  %v1847_v8 = vmul.f32 %v1841_v61, %v1818_v63 }
 0x1cf   : > { %v1856_v7 = vmul.f32 %v1841_v61, %v1827_v1 }
 0x1d0   : > { %v1850_v9 = vmul.f32 %v1841_v61, %v1821_v4 }
 0x1d1   : > { %v3833_v10 = vpack.c.bf16 %v1856_v7, %v1853_v5 }
 0x1d2   : > { %v3835_v11 = vpack.c.bf16 %v1850_v9, %v1847_v8 }
 0x1d3   : > { %1906 = vrot.lane.b32.xlu1 %v3833_v10, %s3553_s17 }
 0x1d4   : > { %1898 = vrot.lane.b32.xlu0 %v3835_v11, %s3553_s17  ;;  %3296 = vmatpush3.bf16.msra.mxu0 %v3835_v11 }
 0x1d5   : > { %3297 = vmatprep.subr.bf16.mxu0 %v3554_v52 }
 0x1d8   : > { %3298 = vmatpush3.bf16.msra.mxu0 %v3833_v10 }
 0x1d9   : > { %3303 = vmatprep.subr.bf16.mxu0 %v3554_v52 }
 0x1db   : > { %3300 = vmatmul.mubr.msk.bf16.vlgmr.msra.gmra.mrb[8].mxu0 %vm1921_vm11, %v3888_v43 }
 0x1dc   : > { %3307 = vmatprep.mubr.msk.bf16.mxu0 %vm3555_vm10, %v3554_v52 }
 0x1e2   : > { %v1712_v14 = vpop.f32.mrb[0].mxu0 }
 0x1e3   : > { %v1816_v15 = vadd.f32 %v1799_v54, %v1712_v14  ;;  %v1714_v17 = vpop.f32.mrb[1].mxu0 }
 0x1e4   : > { %v1817_v18 = vadd.f32 %v1799_v54, %v1714_v17  ;;  %v1716_v20 = vpop.f32.mrb[2].mxu0 }
 0x1e5   : > { %v1819_v21 = vadd.f32 %v1804_v53, %v1716_v20  ;;  %v1718_v22 = vpop.f32.mrb[3].mxu0  ;;  %v1845_v24 = vmul.f32 %v1833_v16, %v1816_v15  ;;  %v1873_v15 = vld [vmem:[%s4090_s3] sm:$0x3] }
 0x1e6   : > { %v1820_v23 = vadd.f32 %v1804_v53, %v1718_v22  ;;  %v1846_v26 = vmul.f32 %v1837_v19, %v1817_v18 }
 0x1e7   : > { %v1848_v25 = vmul.f32 %v1833_v16, %v1819_v21 }
 0x1e8   : > { %v1849_v27 = vmul.f32 %v1837_v19, %v1820_v23 }
 0x1e9   : > { %v3847_v28 = vpack.c.bf16 %v1848_v25, %v1845_v24 }
 0x1ea   : > { %v3849_v29 = vpack.c.bf16 %v1849_v27, %v1846_v26  ;;  %v1722_v30 = vpop.f32.mrb[4].mxu0 }
 0x1eb   : > { %v1822_v3 = vadd.f32 %v1809_v56, %v1722_v30  ;;  %v1724_v31 = vpop.f32.mrb[5].mxu0  ;;  %1894 = vrot.lane.b32.xlu1 %v3847_v28, %s3553_s17 }
 0x1ec   : > { %v1823_v32 = vadd.f32 %v1809_v56, %v1724_v31  ;;  %v1726_v33 = vpop.f32.mrb[6].mxu0  ;;  %1896 = vrot.lane.b32.xlu0 %v3849_v29, %s3553_s17 }
 0x1ed   : > { %v1825_v34 = vadd.f32 %v1814_v59, %v1726_v33  ;;  %v1728_v35 = vpop.f32.mrb[7].mxu0  ;;  %v1851_v37 = vmul.f32 %v1833_v16, %v1822_v3  ;;  %v3128_v33 = vld [vmem:[%s4090_s3 + $0x4] sm:$0x3] }
 0x1ee   : > { %v1826_v36 = vadd.f32 %v1814_v59, %v1728_v35  ;;  %v1852_v39 = vmul.f32 %v1837_v19, %v1823_v32 }
 0x1ef   : > { %v1854_v38 = vmul.f32 %v1833_v16, %v1825_v34 }
 0x1f0   : > { %v1855_v40 = vmul.f32 %v1837_v19, %v1826_v36 }
 0x1f1   : > { %v3855_v41 = vpack.c.bf16 %v1854_v38, %v1851_v37 }
 0x1f2   : > { %v3857_v42 = vpack.c.bf16 %v1855_v40, %v1852_v39 }
 0x1f3   : > { %1902 = vrot.lane.b32.xlu0 %v3855_v41, %s3553_s17 }
 0x1f4   : > { %1904 = vrot.lane.b32.xlu1 %v3857_v42, %s3553_s17 }
 0x1f7   : > { %2008 = vrot.lane.b32.xlu0 %v3847_v28, %s3556_s20 }
 0x1f8   : > { %2010 = vrot.lane.b32.xlu1 %v3849_v29, %s3556_s20 }
 0x1fb   : > { %3474 = vrot.lane.b32.xlu0 %v3544_v6, %s3556_s20 }
 0x1fc   : > { %2016 = vrot.lane.b32.xlu1 %v3855_v41, %s3556_s20 }
 0x1ff   : > { %2020 = vrot.lane.b32.xlu0 %v3833_v10, %s3556_s20 }
 0x200   : > { %2012 = vrot.lane.b32.xlu1 %v3835_v11, %s3556_s20 }
 0x203   : > { %2018 = vrot.lane.b32.xlu0 %v3857_v42, %s3556_s20 }
 0x204   : > { %2123 = vrot.lane.b32.xlu1 %v3847_v28, %s3557_s23 }
 0x207   : > { %2125 = vrot.lane.b32.xlu0 %v3849_v29, %s3557_s23 }
 0x208   : > { %3479 = vrot.lane.b32.xlu1 %v3544_v6, %s3557_s23 }
 0x20b   : > { %2131 = vrot.lane.b32.xlu0 %v3855_v41, %s3557_s23 }
 0x20c   : > { %2135 = vrot.lane.b32.xlu1 %v3833_v10, %s3557_s23 }
 0x20f   : > { %2127 = vrot.lane.b32.xlu0 %v3835_v11, %s3557_s23 }
 0x210   : > { %2243 = vrot.lane.b32.xlu1 %v3849_v29, %s3558_s24 }
 0x213   : > { %2241 = vrot.lane.b32.xlu0 %v3847_v28, %s3558_s24 }
 0x214   : > { %2133 = vrot.lane.b32.xlu1 %v3857_v42, %s3557_s23 }
 0x217   : > { %3484 = vrot.lane.b32.xlu0 %v3544_v6, %s3558_s24 }
 0x218   : > { %2249 = vrot.lane.b32.xlu1 %v3855_v41, %s3558_s24 }
 0x21b   : > { %2253 = vrot.lane.b32.xlu0 %v3833_v10, %s3558_s24 }
 0x21c   : > { %2245 = vrot.lane.b32.xlu1 %v3835_v11, %s3558_s24 }
 0x21f   : > { %2466 = vrot.lane.b32.xlu0 %v3835_v11, %s3545_s29 }
 0x220   : > { %2464 = vrot.lane.b32.xlu1 %v3849_v29, %s3545_s29 }
 0x223   : > { %2251 = vrot.lane.b32.xlu0 %v3857_v42, %s3558_s24  ;;  %s3440_s24 = smul.u32 12, %s4095_s22 }
 0x224   : > { %2462 = vrot.lane.b32.xlu1 %v3847_v28, %s3545_s29 }
 0x227   : > { %3489 = vrot.lane.b32.xlu0 %v3544_v6, %s3545_s29 }
 0x228   : > { %2470 = vrot.lane.b32.xlu1 %v3855_v41, %s3545_s29 }
 0x22b   : > { %2474 = vrot.lane.b32.xlu0 %v3833_v10, %s3545_s29 }
 0x22c   : > { %2583 = vrot.lane.b32.xlu1 %v3835_v11, %s3559_s27 }
 0x22f   : > { %2581 = vrot.lane.b32.xlu0 %v3849_v29, %s3559_s27 }
 0x230   : > { %3494 = vrot.lane.b32.xlu1 %v3544_v6, %s3559_s27 }
 0x233   : > { %2579 = vrot.lane.b32.xlu0 %v3847_v28, %s3559_s27 }
 0x234   : > { %2591 = vrot.lane.b32.xlu1 %v3833_v10, %s3559_s27 }
 0x237   : > { %2587 = vrot.lane.b32.xlu0 %v3855_v41, %s3559_s27 }
 0x238   : > { %2699 = vrot.lane.b32.xlu1 %v3849_v29, %s3547_s7 }
 0x23b   : > { %2701 = vrot.lane.b32.xlu0 %v3835_v11, %s3547_s7 }
 0x23c   : > { %2472 = vrot.lane.b32.xlu1 %v3857_v42, %s3545_s29 }
 0x23f   : > { %3499 = vrot.lane.b32.xlu0 %v3544_v6, %s3547_s7 }
 0x240   : > { %2697 = vrot.lane.b32.xlu1 %v3847_v28, %s3547_s7 }
 0x243   : > { %2589 = vrot.lane.b32.xlu0 %v3857_v42, %s3559_s27  ;;  %s251_s27 = scalar_lea.vmem %s4093_s6, %s3440_s24 }
 0x244   : > { %2705 = vrot.lane.b32.xlu1 %v3855_v41, %s3547_s7 }
 0x245   : > { %v1907_v46 = vpop.permute.xlu1 %1906 }
 0x246   : > { %v1899_v47 = vpop.permute.xlu0 %1898 }
 0x247   : > { %2709 = vrot.lane.b32.xlu0 %v3833_v10, %s3547_s7 }
 0x248   : > { %2818 = vrot.lane.b32.xlu1 %v3835_v11, %s3548_s8 }
 0x24b   : > { %2816 = vrot.lane.b32.xlu0 %v3849_v29, %s3548_s8 }
 0x24c   : > { %2707 = vrot.lane.b32.xlu1 %v3857_v42, %s3547_s7 }
 0x24f   : > { %2814 = vrot.lane.b32.xlu0 %v3847_v28, %s3548_s8 }
 0x250   : > { %2820 = vrot.lane.b32.xlu1 %v3544_v6, %s3548_s8 }
 0x253   : > { %2824 = vrot.lane.b32.xlu0 %v3857_v42, %s3548_s8 }
 0x254   : > { %2826 = vrot.lane.b32.xlu1 %v3833_v10, %s3548_s8 }
 0x257   : > { %2822 = vrot.lane.b32.xlu0 %v3855_v41, %s3548_s8 }
 0x258   : > { %2828 = vrot.lane.b32.xlu1 %v3544_v6, %s3548_s8 }
 0x25b   : > { %2932 = vperm.xlu0 %3466, %v2929_v45  }
 0x25d   : > { %v1895_v49 = vpop.permute.xlu1 %1894 }
 0x25e   : > { %v1897_v50 = vpop.permute.xlu0 %1896  ;;  %v1909_v53 = vsel %vm1908_vm12, %v3471_v48, %v1895_v49 }
 0x25f   : > { %v1910_v51 = vsel %vm1908_vm12, %v1895_v49, %v1897_v50  ;;  %v1911_v62 = vsel %vm1908_vm12, %v1897_v50, %v1899_v47 }
 0x260   : > { %1925 = vmatprep.subr.bf16.mxu1 %v1910_v51 }
 0x261   : > { %1926 = vmatpush1.bf16.msra.mxu1 %v1909_v53 }
 0x265   : > { %v1903_v54 = vpop.permute.xlu0 %1902 }
 0x266   : > { %v1905_v56 = vpop.permute.xlu1 %1904  ;;  %v1912_v58 = vsel %vm1908_vm12, %v3472_v55, %v1903_v54 }
 0x267   : > { %v1913_v57 = vsel %vm1908_vm12, %v1903_v54, %v1905_v56  ;;  %v1914_v1 = vsel %vm1908_vm12, %v1905_v56, %v1907_v46  ;;  %v3131_v54 = vld [vmem:[%s4090_s3 + $0x6] sm:$0x3] }
 0x268   : > { %1927 = vmatprep.subr.bf16.mxu1 %v1913_v57 }
 0x269   : > { %1928 = vmatpush1.bf16.msra.mxu1 %v1912_v58  ;;  %v2009_v59 = vpop.permute.xlu0 %2008 }
 0x26a   : > { %v2011_v61 = vpop.permute.xlu1 %2010  ;;  %3263 = vmatprep.subr.bf16.mxu1 %v3554_v52 }
 0x26b   : > { %v2024_v5 = vsel %vm2022_vm13, %v2009_v59, %v2011_v61 }
 0x26c   : > { %3124 = vmatmul.mubr.msk.bf16.vlgmr.msra.gmra.mrb[4].mxu1 %vm1921_vm11, %v3123_v60 }
 0x26d   : > { %3264 = vmatpush3.bf16.msra.mxu1 %v1911_v62  ;;  %v3475_v63 = vpop.permute.xlu0 %3474  ;;  %3267 = vmatprep.mubr.msk.bf16.mxu1 %vm3555_vm10, %v3554_v52 }
 0x26e   : > { %v2017_v0 = vpop.permute.xlu1 %2016  ;;  %3265 = vmatprep.subr.bf16.mxu1 %v3554_v52  ;;  %v3476_v2 = vunpack.i.l.bf16 %v3475_v63  ;;  %v3477_v8 = vunpack.i.h.bf16 %v3475_v63 }
 0x270   : > { %v2023_v9 = vsel %vm2022_vm13, %v3476_v2, %v2009_v59  ;;  %v2026_v13 = vsel %vm2022_vm13, %v3477_v8, %v2017_v0 }
 0x271   : > { %3266 = vmatpush3.bf16.msra.mxu1 %v1914_v1  ;;  %v2021_v4 = vpop.permute.xlu0 %2020  ;;  %v3137_v1 = vld [vmem:[%s4090_s3 + $0xa] sm:$0x3] }
 0x272   : > { %v2013_v7 = vpop.permute.xlu1 %2012  ;;  %2038 = vmatprep.subr.bf16.mxu1 %v2024_v5 }
 0x273   : > { %v2025_v17 = vsel %vm2022_vm13, %v2011_v61, %v2013_v7 }
 0x274   : > { %3268 = vmatmul.mubr.msk.bf16.vlgmr.msra.gmra.mrb[8].mxu1 %vm1921_vm11, %v3123_v60 }
 0x275   : > { %v2019_v10 = vpop.permute.xlu0 %2018  ;;  %2039 = vmatpush1.bf16.msra.mxu1 %v2023_v9  ;;  %2070 = vmatprep.mubr.bf16.mxu1 %v3544_v6 }
 0x276   : > { %v2124_v11 = vpop.permute.xlu1 %2123  ;;  %v2027_v12 = vsel %vm2022_vm13, %v2017_v0, %v2019_v10  ;;  %v2028_v20 = vsel %vm2022_vm13, %v2019_v10, %v2021_v4 }
 0x277   : > { %2040 = vmatprep.subr.bf16.mxu1 %v2027_v12 }
 0x279   : > { %v2126_v14 = vpop.permute.xlu0 %2125  ;;  %2041 = vmatpush1.bf16.msra.mxu1 %v2026_v13 }
 0x27a   : > { %v3480_v16 = vpop.permute.xlu1 %3479  ;;  %3271 = vmatprep.subr.bf16.mxu1 %v3554_v52  ;;  %v2139_v23 = vsel %vm2137_vm14, %v2124_v11, %v2126_v14 }
 0x27b   : > { %v3481_v21 = vunpack.i.l.bf16 %v3480_v16  ;;  %v3482_v25 = vunpack.i.h.bf16 %v3480_v16 }
 0x27c   : > { %3126 = vmatmul.mubr.msk.bf16.vlgmr.msra.gmra.mrb[12].mxu1 %vm1921_vm11, %v1873_v15 }
 0x27d   : > { %v2132_v18 = vpop.permute.xlu0 %2131  ;;  %3272 = vmatpush3.bf16.msra.mxu1 %v2025_v17  ;;  %3275 = vmatprep.mubr.msk.bf16.mxu1 %vm3555_vm10, %v3554_v52  ;;  %v2138_v26 = vsel %vm2137_vm14, %v3481_v21, %v2124_v11 }
 0x27e   : > { %v2136_v19 = vpop.permute.xlu1 %2135  ;;  %3273 = vmatprep.subr.bf16.mxu1 %v3554_v52  ;;  %v2141_v31 = vsel %vm2137_vm14, %v3482_v25, %v2132_v18 }
 0x281   : > { %v2128_v22 = vpop.permute.xlu0 %2127  ;;  %3274 = vmatpush3.bf16.msra.mxu1 %v2028_v20 }
 0x282   : > { %v2244_v24 = vpop.permute.xlu1 %2243  ;;  %2153 = vmatprep.subr.bf16.mxu1 %v2139_v23  ;;  %v2140_v35 = vsel %vm2137_vm14, %v2126_v14, %v2128_v22 }
 0x284   : > { %3276 = vmatmul.mubr.msk.bf16.vlgmr.msra.gmra.mrb[16].mxu1 %vm1921_vm11, %v1873_v15 }
 0x285   : > { %v2242_v27 = vpop.permute.xlu0 %2241  ;;  %2154 = vmatpush1.bf16.msra.mxu1 %v2138_v26  ;;  %2185 = vmatprep.mubr.bf16.mxu1 %v3544_v6 }
 0x286   : > { %v2134_v30 = vpop.permute.xlu1 %2133  ;;  %v2257_v44 = vsel %vm2255_vm15, %v2242_v27, %v2244_v24 }
 0x287   : > { %v2142_v3 = vsel %vm2137_vm14, %v2132_v18, %v2134_v30  ;;  %v2143_v38 = vsel %vm2137_vm14, %v2134_v30, %v2136_v19 }
 0x288   : > { %2155 = vmatprep.subr.bf16.mxu1 %v2142_v3 }
 0x289   : > { %v3485_v32 = vpop.permute.xlu0 %3484  ;;  %2156 = vmatpush1.bf16.msra.mxu1 %v2141_v31  ;;  %v3143_v31 = vld [vmem:[%s4090_s3 + $0xe] sm:$0x3] }
 0x28a   : > { %v2250_v34 = vpop.permute.xlu1 %2249  ;;  %3279 = vmatprep.subr.bf16.mxu1 %v3554_v52  ;;  %v3486_v39 = vunpack.i.l.bf16 %v3485_v32  ;;  %v3487_v46 = vunpack.i.h.bf16 %v3485_v32 }
 0x28c   : > { %3129 = vmatmul.mubr.msk.bf16.vlgmr.msra.gmra.mrb[20].mxu1 %vm1921_vm11, %v3128_v33  ;;  %v2256_v47 = vsel %vm2255_vm15, %v3486_v39, %v2242_v27  ;;  %v2259_v51 = vsel %vm2255_vm15, %v3487_v46, %v2250_v34 }
 0x28d   : > { %v2254_v36 = vpop.permute.xlu0 %2253  ;;  %3280 = vmatpush3.bf16.msra.mxu1 %v2140_v35  ;;  %3283 = vmatprep.mubr.msk.bf16.mxu1 %vm3555_vm10, %v3554_v52 }
 0x28e   : > { %v2246_v37 = vpop.permute.xlu1 %2245  ;;  %3281 = vmatprep.subr.bf16.mxu1 %v3554_v52 }
 0x28f   : > { %v2258_v57 = vsel %vm2255_vm15, %v2244_v24, %v2246_v37 }
 0x291   : > { %v2467_v40 = vpop.permute.xlu0 %2466  ;;  %3282 = vmatpush3.bf16.msra.mxu1 %v2143_v38 }
 0x292   : > { %v2465_v45 = vpop.permute.xlu1 %2464  ;;  %2271 = vmatprep.subr.bf16.mxu1 %v2257_v44 }
 0x294   : > { %3284 = vmatmul.mubr.msk.bf16.vlgmr.msra.gmra.mrb[24].mxu1 %vm1921_vm11, %v3128_v33 }
 0x295   : > { %v2252_v48 = vpop.permute.xlu0 %2251  ;;  %2272 = vmatpush1.bf16.msra.mxu1 %v2256_v47  ;;  %2303 = vmatprep.mubr.bf16.mxu1 %v3544_v6 }
 0x296   : > { %v2463_v49 = vpop.permute.xlu1 %2462  ;;  %v2260_v50 = vsel %vm2255_vm15, %v2250_v34, %v2252_v48  ;;  %v2261_v62 = vsel %vm2255_vm15, %v2252_v48, %v2254_v36 }
 0x297   : > { %2273 = vmatprep.subr.bf16.mxu1 %v2260_v50  ;;  %v2478_v12 = vsel %vm300_vm1, %v2463_v49, %v2465_v45 }
 0x299   : > { %v3490_v53 = vpop.permute.xlu0 %3489  ;;  %2274 = vmatpush1.bf16.msra.mxu1 %v2259_v51 }
 0x29a   : > { %v3491_v55 = vunpack.i.l.bf16 %v3490_v53  ;;  %v2471_v56 = vpop.permute.xlu1 %2470  ;;  %3287 = vmatprep.subr.bf16.mxu1 %v3554_v52  ;;  %v3492_v60 = vunpack.i.h.bf16 %v3490_v53  ;;  %v3146_v53 = vld [vmem:[%s4090_s3 + $0x10] sm:$0x3] }
 0x29c   : > { %3132 = vmatmul.mubr.msk.bf16.vlgmr.msra.gmra.mrb[28].mxu1 %vm1921_vm11, %v3131_v54  ;;  %v2480_v58 = vsel %vm300_vm1, %v2467_v40, %v3491_v55 }
 0x29d   : > { %v2475_v59 = vpop.permute.xlu0 %2474  ;;  %3288 = vmatpush3.bf16.msra.mxu1 %v2258_v57  ;;  %3304 = vmatpush3.bf16.msra.mxu0 %v2480_v58 }
 0x29e   : > { %v2584_v61 = vpop.permute.xlu1 %2583  ;;  %3289 = vmatprep.subr.bf16.mxu1 %v3554_v52  ;;  %3305 = vmatprep.subr.bf16.mxu0 %v3554_v52  ;;  %v2483_v63 = vsel %vm300_vm1, %v2475_v59, %v3492_v60 }
 0x29f   : > { %3291 = vmatprep.mubr.msk.bf16.mxu1 %vm3555_vm10, %v3554_v52 }
 0x2a1   : > { %v2582_v0 = vpop.permute.xlu0 %2581  ;;  %3290 = vmatpush3.bf16.msra.mxu1 %v2261_v62  ;;  %3306 = vmatpush3.bf16.msra.mxu0 %v2483_v63 }
 0x2a2   : > { %v3495_v2 = vpop.permute.xlu1 %3494  ;;  %2360 = vmatprep.subr.bf16.mxu1 %v3849_v29  ;;  %3311 = vmatprep.subr.bf16.mxu0 %v3554_v52  ;;  %v2597_v17 = vsel %vm2595_vm0, %v2582_v0, %v2584_v61 }
 0x2a3   : > { %v3496_v4 = vunpack.i.l.bf16 %v3495_v2  ;;  %v3497_v5 = vunpack.i.h.bf16 %v3495_v2 }
 0x2a4   : > { %3292 = vmatmul.mubr.msk.bf16.vlgmr.msra.gmra.mrb[32].mxu1 %vm1921_vm11, %v3131_v54  ;;  %3308 = vmatmul.mubr.msk.bf16.vlgmr.msra.gmra.mrb[12].mxu0 %vm1921_vm11, %v3137_v1 }
 0x2a5   : > { %v2580_v7 = vpop.permute.xlu0 %2579  ;;  %2361 = vmatpush1.bf16.msra.mxu1 %v3847_v28  ;;  %v2598_v8 = vsel %vm2595_vm0, %v2584_v61, %v3496_v4  ;;  %2392 = vmatprep.mubr.bf16.mxu1 %v3544_v6  ;;  %v2479_v28 = vsel %vm300_vm1, %v2465_v45, %v2467_v40 }
 0x2a6   : > { %v2592_v9 = vpop.permute.xlu1 %2591  ;;  %2362 = vmatprep.subr.bf16.mxu1 %v3857_v42  ;;  %3312 = vmatpush3.bf16.msra.mxu0 %v2598_v8  ;;  %v3140_v42 = vld [vmem:[%s4090_s3 + $0xc] sm:$0x3]  ;;  %v2596_v19 = vsel %vm2595_vm0, %v2580_v7, %v2582_v0 }
 0x2a7   : > { %3313 = vmatprep.subr.bf16.mxu0 %v3554_v52  ;;  %3315 = vmatprep.mubr.msk.bf16.mxu0 %vm3555_vm10, %v3554_v52  ;;  %v2601_v29 = vsel %vm2595_vm0, %v2592_v9, %v3497_v5 }
 0x2a9   : > { %v2588_v10 = vpop.permute.xlu0 %2587  ;;  %2363 = vmatpush1.bf16.msra.mxu1 %v3855_v41 }
 0x2aa   : > { %v2700_v11 = vpop.permute.xlu1 %2699  ;;  %2493 = vmatprep.subr.bf16.mxu1 %v2479_v28  ;;  %3314 = vmatpush3.bf16.msra.mxu0 %v2601_v29 }
 0x2ab   : > { %3319 = vmatprep.subr.bf16.mxu0 %v3554_v52 }
 0x2ac   : > { %3135 = vmatmul.mubr.msk.bf16.vlgmr.msra.gmra.mrb[36].mxu1 %vm1921_vm11, %v3888_v43 }
 0x2ad   : > { %v2702_v13 = vpop.permute.xlu0 %2701  ;;  %2494 = vmatpush1.bf16.msra.mxu1 %v2478_v12  ;;  %3316 = vmatmul.mubr.msk.bf16.vlgmr.msra.gmra.mrb[16].mxu0 %vm1921_vm11, %v3140_v42 }
 0x2ae   : > { %v2473_v41 = vpop.permute.xlu1 %2472  ;;  %2525 = vmatprep.mubr.bf16.mxu1 %v3544_v6  ;;  %3323 = vmatprep.mubr.msk.bf16.mxu0 %vm3555_vm10, %v3554_v52  ;;  %v2714_v27 = vsel %vm784_vm4, %v2700_v11, %v2702_v13 }
 0x2af   : > { %v2481_v14 = vsel %vm300_vm1, %v2471_v56, %v2473_v41  ;;  %v2482_v15 = vsel %vm300_vm1, %v2473_v41, %v2475_v59 }
 0x2b0   : > { %2495 = vmatprep.subr.bf16.mxu1 %v2482_v15 }
 0x2b1   : > { %v3500_v16 = vpop.permute.xlu0 %3499  ;;  %2496 = vmatpush1.bf16.msra.mxu1 %v2481_v14 }
 0x2b2   : > { %v3501_v43 = vunpack.i.l.bf16 %v3500_v16  ;;  %v2698_v18 = vpop.permute.xlu1 %2697  ;;  %2611 = vmatprep.subr.bf16.mxu1 %v2597_v17  ;;  %v3502_v24 = vunpack.i.h.bf16 %v3500_v16 }
 0x2b3   : > { %v2713_v32 = vsel %vm784_vm4, %v2698_v18, %v2700_v11 }
 0x2b4   : > { %3138 = vmatmul.mubr.msk.bf16.vlgmr.msra.gmra.mrb[40].mxu1 %vm1921_vm11, %v3137_v1  ;;  %v2715_v20 = vsel %vm784_vm4, %v2702_v13, %v3501_v43 }
 0x2b5   : > { %v2590_v21 = vpop.permute.xlu0 %2589  ;;  %2612 = vmatpush1.bf16.msra.mxu1 %v2596_v19  ;;  %3320 = vmatpush3.bf16.msra.mxu0 %v2715_v20 }
 0x2b6   : > { %v2706_v22 = vpop.permute.xlu1 %2705  ;;  %v2600_v23 = vsel %vm2595_vm0, %v2590_v21, %v2592_v9  ;;  %3321 = vmatprep.subr.bf16.mxu0 %v3554_v52  ;;  %2643 = vmatprep.mubr.bf16.mxu1 %v3544_v6  ;;  %v2599_v25 = vsel %vm2595_vm0, %v2588_v10, %v2590_v21 }
 0x2b7   : > { %2613 = vmatprep.subr.bf16.mxu1 %v2600_v23 }
 0x2b9   : > { %v2710_v26 = vpop.permute.xlu0 %2709  ;;  %2614 = vmatpush1.bf16.msra.mxu1 %v2599_v25 }
 0x2ba   : > { %v2718_v30 = vsel %vm784_vm4, %v2710_v26, %v3502_v24  ;;  %v2819_v3 = vpop.permute.xlu1 %2818  ;;  %2728 = vmatprep.subr.bf16.mxu1 %v2714_v27 }
 0x2bb   : > { %3322 = vmatpush3.bf16.msra.mxu0 %v2718_v30 }
 0x2bc   : > { %3141 = vmatmul.mubr.msk.bf16.vlgmr.msra.gmra.mrb[44].mxu1 %vm1921_vm11, %v3140_v42  ;;  %3327 = vmatprep.subr.bf16.mxu0 %v3554_v52 }
 0x2bd   : > { %v2817_v33 = vpop.permute.xlu0 %2816  ;;  %2729 = vmatpush1.bf16.msra.mxu1 %v2713_v32  ;;  %2760 = vmatprep.mubr.bf16.mxu1 %v3544_v6 }
 0x2be   : > { %v2708_v34 = vpop.permute.xlu1 %2707  ;;  %3324 = vmatmul.mubr.msk.bf16.vlgmr.msra.gmra.mrb[20].mxu0 %vm1921_vm11, %v3143_v31  ;;  %v2831_v38 = vsel %vm959_vm5, %v2817_v33, %v2819_v3 }
 0x2bf   : > { %v2716_v35 = vsel %vm784_vm4, %v2706_v22, %v2708_v34  ;;  %v2717_v36 = vsel %vm784_vm4, %v2708_v34, %v2710_v26  ;;  %3331 = vmatprep.mubr.msk.bf16.mxu0 %vm3555_vm10, %v3554_v52 }
 0x2c0   : > { %2730 = vmatprep.subr.bf16.mxu1 %v2717_v36 }
 0x2c1   : > { %v2815_v37 = vpop.permute.xlu0 %2814  ;;  %2731 = vmatpush1.bf16.msra.mxu1 %v2716_v35 }
 0x2c2   : > { %v2821_v39 = vpop.permute.xlu1 %2820  ;;  %2845 = vmatprep.subr.bf16.mxu1 %v2831_v38  ;;  %v2830_v44 = vsel %vm959_vm5, %v2815_v37, %v2817_v33 }
 0x2c3   : > { %v2832_v40 = vsel %vm959_vm5, %v2819_v3, %v2821_v39 }
 0x2c4   : > { %3144 = vmatmul.mubr.msk.bf16.vlgmr.msra.gmra.mrb[48].mxu1 %vm1921_vm11, %v3143_v31  ;;  %3328 = vmatpush3.bf16.msra.mxu0 %v2832_v40 }
 0x2c5   : > { %v2825_v45 = vpop.permute.xlu0 %2824  ;;  %2846 = vmatpush1.bf16.msra.mxu1 %v2830_v44  ;;  %3329 = vmatprep.subr.bf16.mxu0 %v3554_v52 }
 0x2c6   : > { %v2827_v46 = vpop.permute.xlu1 %2826  ;;  %2877 = vmatprep.mubr.bf16.mxu1 %v3544_v6  ;;  %v2435_v6 = vpop.f32.mrb[8].mxu0 }
 0x2c7   : > { %v2834_v47 = vsel %vm959_vm5, %v2825_v45, %v2827_v46  ;;  %v3301_v52 = vpop.f32.mrb[9].mxu0 }
 0x2c8   : > { %2847 = vmatprep.subr.bf16.mxu1 %v2834_v47  ;;  %v2438_v54 = vpop.f32.mrb[10].mxu0 }
 0x2c9   : > { %v2823_v48 = vpop.permute.xlu0 %2822  ;;  %v3302_v55 = vpop.f32.mrb[11].mxu0 }
 0x2ca   : > { %v2833_v49 = vsel %vm959_vm5, %v2823_v48, %v2825_v45  ;;  %v2829_v50 = vpop.permute.xlu1 %2828 }
 0x2cb   : > { %v2835_v51 = vsel %vm959_vm5, %v2827_v46, %v2829_v50  ;;  %2848 = vmatpush1.bf16.msra.mxu1 %v2833_v49 }
 0x2cc   : > { %3330 = vmatpush3.bf16.msra.mxu0 %v2835_v51 }
 0x2ce   : > { %3147 = vmatmul.mubr.msk.bf16.vlgmr.msra.gmra.mrb[52].mxu1 %vm1921_vm11, %v3146_v53 }
 0x2cf   : > { %3332 = vmatmul.mubr.msk.bf16.vlgmr.msra.gmra.mrb[24].mxu0 %vm1921_vm11, %v3146_v53 }
 0x33f   : > { %v1959_v56 = vpop.f32.mrb[4].mxu1 }
 0x340   : > { %v1961_v57 = vpop.f32.mrb[5].mxu1 }
 0x341   : > { %v1963_v58 = vpop.f32.mrb[6].mxu1 }
 0x342   : > { %v1964_v59 = vpop.f32.mrb[7].mxu1 }
 0x347   : > { %v2000_v60 = vpop.f32.mrb[8].mxu1 }
 0x348   : > { %v3269_v61 = vpop.f32.mrb[9].mxu1 }
 0x349   : > { %v2003_v62 = vpop.f32.mrb[10].mxu1 }
 0x34a   : > { %v3270_v63 = vpop.f32.mrb[11].mxu1 }
 0x34f   : > { %v2072_v0 = vpop.f32.mrb[12].mxu1 }
 0x350   : > { %v2073_v1 = vadd.f32 %v2072_v0, %v1959_v56  ;;  %v2074_v2 = vpop.f32.mrb[13].mxu1 }
 0x351   : > { %v2075_v4 = vadd.f32 %v2074_v2, %v1961_v57  ;;  %v2076_v5 = vpop.f32.mrb[14].mxu1 }
 0x352   : > { %v2077_v7 = vpop.f32.mrb[15].mxu1 }
 0x357   : > { %v2113_v8 = vpop.f32.mrb[16].mxu1 }
 0x358   : > { %v2114_v9 = vadd.f32 %v2113_v8, %v2000_v60  ;;  %v3277_v29 = vpop.f32.mrb[17].mxu1 }
 0x359   : > { %v2116_v10 = vpop.f32.mrb[18].mxu1 }
 0x35a   : > { %v3278_v28 = vpop.f32.mrb[19].mxu1  ;;  %v2933_v10 = vpop.permute.xlu0 %2932 }
 0x35f   : > { %v2187_v11 = vpop.f32.mrb[20].mxu1 }
 0x360   : > { %v2234_v42 = vadd.f32 %v2187_v11, %v2073_v1  ;;  %v2189_v12 = vpop.f32.mrb[21].mxu1 }
 0x361   : > { %v2235_v13 = vadd.f32 %v2189_v12, %v2075_v4  ;;  %v2191_v41 = vpop.f32.mrb[22].mxu1 }
 0x362   : > { %v2192_v14 = vpop.f32.mrb[23].mxu1 }
 0x367   : > { %v2228_v15 = vpop.f32.mrb[24].mxu1 }
 0x368   : > { %v2236_v16 = vadd.f32 %v2228_v15, %v2114_v9  ;;  %v3285_v17 = vpop.f32.mrb[25].mxu1 }
 0x369   : > { %v2231_v43 = vpop.f32.mrb[26].mxu1 }
 0x36a   : > { %v3286_v18 = vpop.f32.mrb[27].mxu1 }
 0x36f   : > { %v2305_v19 = vpop.f32.mrb[28].mxu1 }
 0x370   : > { %v2352_v20 = vadd.f32 %v2305_v19, %v2234_v42  ;;  %v2307_v21 = vpop.f32.mrb[29].mxu1 }
 0x371   : > { %v2353_v22 = vadd.f32 %v2307_v21, %v2235_v13  ;;  %v2309_v23 = vpop.f32.mrb[30].mxu1 }
 0x372   : > { %v2310_v24 = vpop.f32.mrb[31].mxu1 }
 0x377   : > { %v2346_v25 = vpop.f32.mrb[32].mxu1  ;;  %v2568_v26 = vpop.f32.mrb[12].mxu0 }
 0x378   : > { %v2354_v27 = vadd.f32 %v2346_v25, %v2236_v16  ;;  %v3293_v30 = vpop.f32.mrb[33].mxu1  ;;  %v3309_v3 = vpop.f32.mrb[13].mxu0 }
 0x379   : > { %v2349_v31 = vpop.f32.mrb[34].mxu1  ;;  %v2571_v32 = vpop.f32.mrb[14].mxu0 }
 0x37a   : > { %v2443_v33 = vadd.f32 %v2435_v6, %v2354_v27  ;;  %v3294_v34 = vpop.f32.mrb[35].mxu1  ;;  %v3310_v35 = vpop.f32.mrb[15].mxu0 }
 0x37c   : > { %v2576_v36 = vadd.f32 %v2568_v26, %v2443_v33 }
 0x37f   : > { %v2394_v37 = vpop.f32.mrb[36].mxu1 }
 0x380   : > { %v2441_v38 = vadd.f32 %v2394_v37, %v2352_v20  ;;  %v2396_v39 = vpop.f32.mrb[37].mxu1  ;;  %v2686_v40 = vpop.f32.mrb[16].mxu0 }
 0x381   : > { %v2442_v44 = vadd.f32 %v2396_v39, %v2353_v22  ;;  %v2694_v45 = vadd.f32 %v2686_v40, %v2576_v36  ;;  %v2398_v46 = vpop.f32.mrb[38].mxu1  ;;  %v3317_v47 = vpop.f32.mrb[17].mxu0 }
 0x382   : > { %v2399_v48 = vpop.f32.mrb[39].mxu1  ;;  %v2689_v49 = vpop.f32.mrb[18].mxu0 }
 0x383   : > { %v3318_v50 = vpop.f32.mrb[19].mxu0 }
 0x387   : > { %v2527_v51 = vpop.f32.mrb[40].mxu1 }
 0x388   : > { %v2574_v53 = vadd.f32 %v2527_v51, %v2441_v38  ;;  %v2529_v52 = vpop.f32.mrb[41].mxu1 }
 0x389   : > { %v2575_v54 = vadd.f32 %v2529_v52, %v2442_v44  ;;  %v2531_v55 = vpop.f32.mrb[42].mxu1 }
 0x38a   : > { %v2532_v6 = vpop.f32.mrb[43].mxu1 }
 0x38f   : > { %v2645_v56 = vpop.f32.mrb[44].mxu1 }
 0x390   : > { %v2692_v57 = vadd.f32 %v2645_v56, %v2574_v53  ;;  %v2647_v58 = vpop.f32.mrb[45].mxu1 }
 0x391   : > { %v2693_v59 = vadd.f32 %v2647_v58, %v2575_v54  ;;  %v2649_v60 = vpop.f32.mrb[46].mxu1  ;;  %v2803_v61 = vpop.f32.mrb[20].mxu0 }
 0x392   : > { %v2811_v62 = vadd.f32 %v2803_v61, %v2694_v45  ;;  %v2650_v63 = vpop.f32.mrb[47].mxu1  ;;  %v3325_v0 = vpop.f32.mrb[21].mxu0 }
 0x393   : > { %v2806_v1 = vpop.f32.mrb[22].mxu0 }
 0x394   : > { %v3326_v2 = vpop.f32.mrb[23].mxu0 }
 0x397   : > { %v2762_v4 = vpop.f32.mrb[48].mxu1 }
 0x398   : > { %v2809_v5 = vadd.f32 %v2762_v4, %v2692_v57  ;;  %v2764_v7 = vpop.f32.mrb[49].mxu1 }
 0x399   : > { %v2810_v8 = vadd.f32 %v2764_v7, %v2693_v59  ;;  %v2766_v9 = vpop.f32.mrb[50].mxu1 }
 0x39a   : > { %v2767_v29 = vpop.f32.mrb[51].mxu1 }
 0x3a1   : > { %v2879_v28 = vpop.f32.mrb[52].mxu1 }
 0x3a2   : > { %v2926_v11 = vadd.f32 %v2879_v28, %v2809_v5  ;;  %v2881_v42 = vpop.f32.mrb[53].mxu1  ;;  %v2920_v12 = vpop.f32.mrb[24].mxu0 }
 0x3a3   : > { %v2927_v13 = vadd.f32 %v2881_v42, %v2810_v8  ;;  %v2928_v41 = vadd.f32 %v2920_v12, %v2811_v62  ;;  %v2883_v14 = vpop.f32.mrb[54].mxu1  ;;  %v3333_v15 = vpop.f32.mrb[25].mxu0 }
 0x3a4   : > { %v2935_v16 = vadd.f32 %v2933_v10, %v2926_v11  ;;  %v2884_v17 = vpop.f32.mrb[55].mxu1  ;;  %v2923_v43 = vpop.f32.mrb[26].mxu0 }
 0x3a5   : > { %v2936_v18 = vadd.f32 %v2933_v10, %v2927_v13  ;;  %v2937_v19 = vadd.f32 %v2933_v10, %v2928_v41  ;;  %v3334_v20 = vpop.f32.mrb[27].mxu0 }
 0x3a6   : > { %v3149_v21 = vmul.f32 -1.442695, %v2935_v16 }
 0x3a7   : > { %v3150_v22 = vmul.f32 -1.442695, %v2936_v18  ;;  %v3151_v23 = vmul.f32 -1.442695, %v2937_v19 }
 0x3a8   : > { %3523 = vpow2.f32 %v3149_v21 }
 0x3a9   : > { %3525 = vpow2.f32 %v3150_v22 }
 0x3aa   : > { %3527 = vpow2.f32 %v3151_v23 }
 0x3b2   : > { %v3524_v24 = vpop.eup %3523 }
 0x3b3   : > { %v3526_v25 = vpop.eup %3525  ;;  %v2947_v26 = vadd.f32 1.0, %v3524_v24 }
 0x3b4   : > { %v3528_v27 = vpop.eup %3527  ;;  %v2948_v30 = vadd.f32 1.0, %v3526_v25 }
 0x3b5   : > { %3529 = vrcp.f32 %v2947_v26  ;;  %v2949_v3 = vadd.f32 1.0, %v3528_v27 }
 0x3b6   : > { %3531 = vrcp.f32 %v2948_v30 }
 0x3b7   : > { %3533 = vrcp.f32 %v2949_v3 }
 0x3bf   : > { %v3530_v31 = vpop.eup %3529 }
 0x3c0   : > { %v3532_v32 = vpop.eup %3531  ;;  %v2956_v33 = vmul.f32 %v3530_v31, %v2935_v16 }
 0x3c1   : > { %v3534_v34 = vpop.eup %3533  ;;  %v2957_v35 = vmul.f32 %v3532_v32, %v2936_v18 }
 0x3c2   : > { %v2958_v36 = vmul.f32 %v3534_v34, %v2937_v19 }
 0x3c3   : > { %v2961_v37 = vcombine.low %v2956_v33, %v2957_v35 }
 0x3c4   : > { %2964 = vst [vmem:[%s251_s27 + $0x8] sm:$0xf] %v2958_v36 }
 0x3c5   : > { %2963 = vst [vmem:[%s251_s27] sm:$0xff] %v2961_v37 }
 0x3c6 PF: > { %s16_s21 = sadd.s32 1, %s3541_s21  }
 0x3c7   : > { %p13_p4 = scmp.ge.s32.totalorder %s16_s21, 4  }
 0x3c9   :  { %15 = sbr.rel (!%p13_p4) target bundleno = 1 (0x1), region = 90 }

</bundles_post_ra>
